<compile_context>
chip_gen: v7x
topology: tpu7x:2x2x1
jax: 0.10.0
libtpu: 0.0.40
codegen_flags: <defaults>
</compile_context>

<pallas_src>
import functools

import jax
import jax.numpy as jnp
import numpy as np
from jax.experimental import pallas as pl
from jax.experimental.pallas import tpu as pltpu

LANE_TARGET = 2048  # target flattened-image lanes per grid step


# ---------------------------------------------------------------------------
# Fused kernel: 3x3 conv (9 shifted matmuls) + bias + ReLU + masked global
# average pool + 2-layer MLP, all in the lane-dense (channels, spatial) layout.
# ---------------------------------------------------------------------------
def _fused_zong_kernel(x_ref, w_ref, b_ref, p_ref,
                       w1_ref, b1_ref, w2_ref, b2_ref,
                       o_ref, pooled_ref, *,
                       imgs_per_tile, cin, wp, cl):
    """One grid step processes `imgs_per_tile` whole images.

    x_ref  : (imgs, Cin, Lp)   mxu dtype  zero-padded, row-flattened images
    w_ref  : (Cout, 9*Cin)     mxu dtype  conv weight, tap-major lanes
    b_ref  : (Cout, 1)         f32        conv bias
    p_ref  : (CL, 1)           mxu dtype  pooling vector (1/(H*W) on valid cols)
    w1/b1  : (HID, Cout),(HID,1) f32      mainmodel fc1 (transposed)
    w2/b2  : (OUT, HID),(OUT,1)  f32      mainmodel fc2 (transposed)
    o_ref  : (1, OUT, imgs)    f32        per-step disjoint output block
    pooled_ref : (Cout, imgs)  f32        VMEM scratch for pooled features
    """
    cout = w_ref.shape[0]
    w_all = w_ref[...]                                           # (Cout, 9*Cin)

    for img in range(imgs_per_tile):
        x_img = x_ref[img]                                       # (Cin, Lp)
        acc = jnp.zeros((cout, cl), jnp.float32)
        # jiangzao conv: 9 shifted taps, contraction over Cin, f32 accumulation.
        for kh in range(3):
            for kw in range(3):
                t = kh * 3 + kw
                off = kh * wp + kw
                x_sl = x_img[:, off:off + cl]                    # (Cin, CL)
                w_t = w_all[:, t * cin:(t + 1) * cin]            # (Cout, Cin)
                acc = acc + jnp.dot(w_t, x_sl,
                                    preferred_element_type=jnp.float32)
        # bias + ReLU in f32 (lane-dense: Cout sublanes x CL lanes).
        acc = jnp.maximum(acc + b_ref[...], 0.0)                 # (Cout, CL)
        # Masked global average pool as an MXU matvec; the pooling vector is
        # zero on the padded (garbage) columns, so they never contribute.
        pooled_ref[:, pl.ds(img, 1)] = jnp.dot(
            acc.astype(p_ref.dtype), p_ref[...],
            preferred_element_type=jnp.float32)                  # (Cout, 1)

    pooled = pooled_ref[...]                                     # (Cout, r)
    # mainmodel: Linear + ReLU, Linear (f32 throughout; tiny matmuls).
    h = jnp.dot(w1_ref[...], pooled, preferred_element_type=jnp.float32)
    h = jnp.maximum(h + b1_ref[...], 0.0)                        # (HID, r)
    y = jnp.dot(w2_ref[...], h, preferred_element_type=jnp.float32)
    y = y + b2_ref[...]                                          # (OUT, r)
    o_ref[0] = y.astype(o_ref.dtype)


# ---------------------------------------------------------------------------
# zong.forward
# ---------------------------------------------------------------------------
def zong_forward(x_nchw, params, *, mxu_dtype=jnp.bfloat16):
    N, Cin, H, W = x_nchw.shape
    conv_w, conv_b = params["conv_w"], params["conv_b"]
    fc1_w, fc1_b = params["fc1_w"], params["fc1_b"]
    fc2_w, fc2_b = params["fc2_w"], params["fc2_b"]
    Cout = conv_w.shape[0]
    HID, OUT = fc1_w.shape[1], fc2_w.shape[1]

    Hp, Wp = H + 2, W + 2
    CL = H * Wp                                 # conv output cols per image
    # Flattened padded image length, lane-aligned and long enough for the
    # largest shift (kh=2, kw=2 -> offset 2*Wp+2) to stay in bounds.
    Lp = -(-(Hp * Wp + 2) // 128) * 128

    # --- input prep: zero-pad + flatten only (no 9x im2col, no transpose). ---
    xp = jnp.pad(x_nchw, ((0, 0), (0, 0), (1, 1), (1, 1)))       # (N,Cin,Hp,Wp)
    x_flat = xp.reshape(N, Cin, Hp * Wp)
    x_flat = jnp.pad(x_flat, ((0, 0), (0, 0), (0, Lp - Hp * Wp))).astype(mxu_dtype)

    # Conv weight, tap-major lanes: w_mat[o, t*Cin + c] = conv_w[o, c, kh, kw].
    w_mat = jnp.transpose(conv_w, (0, 2, 3, 1)).reshape(Cout, 9 * Cin)
    w_mat = w_mat.astype(mxu_dtype)

    # Pooling vector over the padded-width layout: 1/(H*W) on valid columns
    # (w < W), 0 on the width-padding garbage columns.
    q = np.arange(CL)
    pool_vec = ((q % Wp) < W).astype(np.float32) / float(H * W)
    pool_vec = jnp.asarray(pool_vec.reshape(CL, 1), dtype=mxu_dtype)

    # --- tiling: whole images per grid step, ~LANE_TARGET lanes per step. ---
    imgs_per_tile = max(1, min(N, LANE_TARGET // Lp))
    while N % imgs_per_tile:
        imgs_per_tile -= 1
    n_tiles = N // imgs_per_tile

    tile_in_bytes = imgs_per_tile * Cin * Lp * x_flat.dtype.itemsize
    vmem_limit = int(max(16 * 1024 * 1024, 8 * tile_in_bytes))

    flops = (N * (2 * 9 * Cin * Cout * CL + 2 * Cout * CL)
             + 2 * N * (Cout * HID + HID * OUT))
    bytes_accessed = (x_flat.size * x_flat.dtype.itemsize
                      + w_mat.size * w_mat.dtype.itemsize
                      + CL * pool_vec.dtype.itemsize
                      + (Cout + HID + OUT + Cout * HID + HID * OUT) * 4
                      + N * OUT * 4)

    kernel = functools.partial(_fused_zong_kernel, imgs_per_tile=imgs_per_tile,
                               cin=Cin, wp=Wp, cl=CL)

    out3 = pl.pallas_call(
        kernel,
        out_shape=jax.ShapeDtypeStruct((n_tiles, OUT, imgs_per_tile), jnp.float32),
        grid=(n_tiles,),
        in_specs=[
            pl.BlockSpec((imgs_per_tile, Cin, Lp), lambda i: (i, 0, 0)),  # images
            pl.BlockSpec((Cout, 9 * Cin), lambda i: (0, 0)),              # conv W
            pl.BlockSpec((Cout, 1), lambda i: (0, 0)),                    # conv b
            pl.BlockSpec((CL, 1), lambda i: (0, 0)),                      # pool vec
            pl.BlockSpec((HID, Cout), lambda i: (0, 0)),                  # fc1 W^T
            pl.BlockSpec((HID, 1), lambda i: (0, 0)),                     # fc1 b
            pl.BlockSpec((OUT, HID), lambda i: (0, 0)),                   # fc2 W^T
            pl.BlockSpec((OUT, 1), lambda i: (0, 0)),                     # fc2 b
        ],
        # Disjoint per-step output blocks -> grid axis is truly parallel
        # (lets v7x shard the batch across both TensorCores).
        out_specs=pl.BlockSpec((1, OUT, imgs_per_tile), lambda i: (i, 0, 0)),
        scratch_shapes=[pltpu.VMEM((Cout, imgs_per_tile), jnp.float32)],
        compiler_params=pltpu.CompilerParams(
            dimension_semantics=("parallel",),
            vmem_limit_bytes=vmem_limit),
        cost_estimate=pl.CostEstimate(flops=int(flops), transcendentals=0,
                                      bytes_accessed=int(bytes_accessed)),
    )(x_flat, w_mat,
      conv_b.reshape(Cout, 1).astype(jnp.float32),
      pool_vec,
      fc1_w.T.astype(jnp.float32), fc1_b.reshape(HID, 1).astype(jnp.float32),
      fc2_w.T.astype(jnp.float32), fc2_b.reshape(OUT, 1).astype(jnp.float32))

    # (n_tiles, OUT, imgs) -> (N, OUT)
    return out3.transpose(0, 2, 1).reshape(N, OUT)


# ---------------------------------------------------------------------------
# Pure-JAX reference (module semantics) for correctness checking
# ---------------------------------------------------------------------------
def zong_reference(x_nchw, params):
    x = jnp.transpose(x_nchw, (0, 2, 3, 1))
    y = jax.lax.conv_general_dilated(
        x, jnp.transpose(params["conv_w"], (2, 3, 1, 0)),
        window_strides=(1, 1), padding="SAME",
        dimension_numbers=("NHWC", "HWIO", "NHWC"))
    y = jnp.maximum(y + params["conv_b"], 0.0)
    p = jnp.mean(y, axis=(1, 2))
    h = jnp.maximum(p @ params["fc1_w"] + params["fc1_b"], 0.0)
    return h @ params["fc2_w"] + params["fc2_b"]


if __name__ == "__main__":
    key = jax.random.PRNGKey(0)
    kx, k1, k2, k3, k4 = jax.random.split(key, 5)

    N, Cin, H, W = 2, 4, 16, 16
    Cout, HID, NCLS = 8, 32, 10

    x = jax.random.normal(kx, (N, Cin, H, W), dtype=jnp.float32)   # NCHW input

    params = {
        "conv_w": 0.1 * jax.random.normal(k1, (Cout, Cin, 3, 3), jnp.float32),
        "conv_b": 0.1 * jnp.arange(Cout, dtype=jnp.float32),
        "fc1_w": 0.1 * jax.random.normal(k2, (Cout, HID), jnp.float32),
        "fc1_b": 0.01 * jnp.ones((HID,), jnp.float32),
        "fc2_w": 0.1 * jax.random.normal(k3, (HID, NCLS), jnp.float32),
        "fc2_b": 0.01 * jnp.ones((NCLS,), jnp.float32),
    }

    out = jax.block_until_ready(zong_forward(x, params))
    ref = jax.block_until_ready(zong_reference(x, params))
    np.testing.assert_allclose(np.asarray(out), np.asarray(ref),
                               rtol=1e-2, atol=1e-2)
    assert out.shape == (N, NCLS)
    print("KERNEL_OK")
</pallas_src>

<mosaic_0001>
module attributes {stable_mosaic.version = 11 : i64} {
  func.func @_fused_zong_kernel(%arg0: i32, %arg1: memref<2x4x384xbf16, #tpu.memory_space<vmem>>, %arg2: memref<8x36xbf16, #tpu.memory_space<vmem>>, %arg3: memref<8x1xf32, #tpu.memory_space<vmem>>, %arg4: memref<288x1xbf16, #tpu.memory_space<vmem>>, %arg5: memref<32x8xf32, #tpu.memory_space<vmem>>, %arg6: memref<32x1xf32, #tpu.memory_space<vmem>>, %arg7: memref<10x32xf32, #tpu.memory_space<vmem>>, %arg8: memref<10x1xf32, #tpu.memory_space<vmem>>, %arg9: memref<1x10x2xf32, #tpu.memory_space<vmem>>, %arg10: memref<8x2xf32, #tpu.memory_space<vmem>>) attributes {dimension_semantics = [#tpu.dimension_semantics<parallel>], iteration_bounds = array<i64: 1>, scalar_prefetch = 0 : i64, scratch_operands = 1 : i64, tpu.core_type = #tpu.core_type<tc>, window_params = [{transform_indices = @transform_0, window_bounds = array<i64: 2, 4, 384>}, {pipeline_mode = #tpu.pipeline_mode<synchronous>, transform_indices = @transform_1, window_bounds = array<i64: 8, 36>}, {pipeline_mode = #tpu.pipeline_mode<synchronous>, transform_indices = @transform_2, window_bounds = array<i64: 8, 1>}, {pipeline_mode = #tpu.pipeline_mode<synchronous>, transform_indices = @transform_3, window_bounds = array<i64: 288, 1>}, {pipeline_mode = #tpu.pipeline_mode<synchronous>, transform_indices = @transform_4, window_bounds = array<i64: 32, 8>}, {pipeline_mode = #tpu.pipeline_mode<synchronous>, transform_indices = @transform_5, window_bounds = array<i64: 32, 1>}, {pipeline_mode = #tpu.pipeline_mode<synchronous>, transform_indices = @transform_6, window_bounds = array<i64: 10, 32>}, {pipeline_mode = #tpu.pipeline_mode<synchronous>, transform_indices = @transform_7, window_bounds = array<i64: 10, 1>}, {transform_indices = @transform_8, window_bounds = array<i64: 1, 10, 2>}]} {
    %c0 = arith.constant 0 : index
    %c0_0 = arith.constant 0 : index
    %0 = vector.load %arg2[%c0, %c0_0] : memref<8x36xbf16, #tpu.memory_space<vmem>>, vector<8x36xbf16>
    %c0_1 = arith.constant 0 : index
    %c0_2 = arith.constant 0 : index
    %c0_3 = arith.constant 0 : index
    %1 = vector.load %arg1[%c0_1, %c0_2, %c0_3] : memref<2x4x384xbf16, #tpu.memory_space<vmem>>, vector<1x4x384xbf16>
    %2 = vector.shape_cast %1 : vector<1x4x384xbf16> to vector<4x384xbf16>
    %cst = arith.constant 0.000000e+00 : f32
    %3 = vector.broadcast %cst : f32 to vector<8x288xf32>
    %4 = vector.extract_strided_slice %2 {offsets = [0, 0], sizes = [4, 288], strides = [1, 1]} : vector<4x384xbf16> to vector<4x288xbf16>
    %5 = vector.extract_strided_slice %0 {offsets = [0, 0], sizes = [8, 4], strides = [1, 1]} : vector<8x36xbf16> to vector<8x4xbf16>
    %cst_4 = arith.constant dense<0.000000e+00> : vector<8x288xf32>
    %6 = tpu.matmul %5, %4, %cst_4 {dimension_numbers = #tpu.dot_dimension_numbers<[1], [0], [0], [1], [0, 0, 1, 1], [], []>} : vector<8x4xbf16>, vector<4x288xbf16>, vector<8x288xf32> -> vector<8x288xf32>
    %7 = arith.addf %3, %6 : vector<8x288xf32>
    %8 = vector.extract_strided_slice %2 {offsets = [0, 1], sizes = [4, 288], strides = [1, 1]} : vector<4x384xbf16> to vector<4x288xbf16>
    %9 = vector.extract_strided_slice %0 {offsets = [0, 4], sizes = [8, 4], strides = [1, 1]} : vector<8x36xbf16> to vector<8x4xbf16>
    %cst_5 = arith.constant dense<0.000000e+00> : vector<8x288xf32>
    %10 = tpu.matmul %9, %8, %cst_5 {dimension_numbers = #tpu.dot_dimension_numbers<[1], [0], [0], [1], [0, 0, 1, 1], [], []>} : vector<8x4xbf16>, vector<4x288xbf16>, vector<8x288xf32> -> vector<8x288xf32>
    %11 = arith.addf %7, %10 : vector<8x288xf32>
    %12 = vector.extract_strided_slice %2 {offsets = [0, 2], sizes = [4, 288], strides = [1, 1]} : vector<4x384xbf16> to vector<4x288xbf16>
    %13 = vector.extract_strided_slice %0 {offsets = [0, 8], sizes = [8, 4], strides = [1, 1]} : vector<8x36xbf16> to vector<8x4xbf16>
    %cst_6 = arith.constant dense<0.000000e+00> : vector<8x288xf32>
    %14 = tpu.matmul %13, %12, %cst_6 {dimension_numbers = #tpu.dot_dimension_numbers<[1], [0], [0], [1], [0, 0, 1, 1], [], []>} : vector<8x4xbf16>, vector<4x288xbf16>, vector<8x288xf32> -> vector<8x288xf32>
    %15 = arith.addf %11, %14 : vector<8x288xf32>
    %16 = vector.extract_strided_slice %2 {offsets = [0, 18], sizes = [4, 288], strides = [1, 1]} : vector<4x384xbf16> to vector<4x288xbf16>
    %17 = vector.extract_strided_slice %0 {offsets = [0, 12], sizes = [8, 4], strides = [1, 1]} : vector<8x36xbf16> to vector<8x4xbf16>
    %cst_7 = arith.constant dense<0.000000e+00> : vector<8x288xf32>
    %18 = tpu.matmul %17, %16, %cst_7 {dimension_numbers = #tpu.dot_dimension_numbers<[1], [0], [0], [1], [0, 0, 1, 1], [], []>} : vector<8x4xbf16>, vector<4x288xbf16>, vector<8x288xf32> -> vector<8x288xf32>
    %19 = arith.addf %15, %18 : vector<8x288xf32>
    %20 = vector.extract_strided_slice %2 {offsets = [0, 19], sizes = [4, 288], strides = [1, 1]} : vector<4x384xbf16> to vector<4x288xbf16>
    %21 = vector.extract_strided_slice %0 {offsets = [0, 16], sizes = [8, 4], strides = [1, 1]} : vector<8x36xbf16> to vector<8x4xbf16>
    %cst_8 = arith.constant dense<0.000000e+00> : vector<8x288xf32>
    %22 = tpu.matmul %21, %20, %cst_8 {dimension_numbers = #tpu.dot_dimension_numbers<[1], [0], [0], [1], [0, 0, 1, 1], [], []>} : vector<8x4xbf16>, vector<4x288xbf16>, vector<8x288xf32> -> vector<8x288xf32>
    %23 = arith.addf %19, %22 : vector<8x288xf32>
    %24 = vector.extract_strided_slice %2 {offsets = [0, 20], sizes = [4, 288], strides = [1, 1]} : vector<4x384xbf16> to vector<4x288xbf16>
    %25 = vector.extract_strided_slice %0 {offsets = [0, 20], sizes = [8, 4], strides = [1, 1]} : vector<8x36xbf16> to vector<8x4xbf16>
    %cst_9 = arith.constant dense<0.000000e+00> : vector<8x288xf32>
    %26 = tpu.matmul %25, %24, %cst_9 {dimension_numbers = #tpu.dot_dimension_numbers<[1], [0], [0], [1], [0, 0, 1, 1], [], []>} : vector<8x4xbf16>, vector<4x288xbf16>, vector<8x288xf32> -> vector<8x288xf32>
    %27 = arith.addf %23, %26 : vector<8x288xf32>
    %28 = vector.extract_strided_slice %2 {offsets = [0, 36], sizes = [4, 288], strides = [1, 1]} : vector<4x384xbf16> to vector<4x288xbf16>
    %29 = vector.extract_strided_slice %0 {offsets = [0, 24], sizes = [8, 4], strides = [1, 1]} : vector<8x36xbf16> to vector<8x4xbf16>
    %cst_10 = arith.constant dense<0.000000e+00> : vector<8x288xf32>
    %30 = tpu.matmul %29, %28, %cst_10 {dimension_numbers = #tpu.dot_dimension_numbers<[1], [0], [0], [1], [0, 0, 1, 1], [], []>} : vector<8x4xbf16>, vector<4x288xbf16>, vector<8x288xf32> -> vector<8x288xf32>
    %31 = arith.addf %27, %30 : vector<8x288xf32>
    %32 = vector.extract_strided_slice %2 {offsets = [0, 37], sizes = [4, 288], strides = [1, 1]} : vector<4x384xbf16> to vector<4x288xbf16>
    %33 = vector.extract_strided_slice %0 {offsets = [0, 28], sizes = [8, 4], strides = [1, 1]} : vector<8x36xbf16> to vector<8x4xbf16>
    %cst_11 = arith.constant dense<0.000000e+00> : vector<8x288xf32>
    %34 = tpu.matmul %33, %32, %cst_11 {dimension_numbers = #tpu.dot_dimension_numbers<[1], [0], [0], [1], [0, 0, 1, 1], [], []>} : vector<8x4xbf16>, vector<4x288xbf16>, vector<8x288xf32> -> vector<8x288xf32>
    %35 = arith.addf %31, %34 : vector<8x288xf32>
    %36 = vector.extract_strided_slice %2 {offsets = [0, 38], sizes = [4, 288], strides = [1, 1]} : vector<4x384xbf16> to vector<4x288xbf16>
    %37 = vector.extract_strided_slice %0 {offsets = [0, 32], sizes = [8, 4], strides = [1, 1]} : vector<8x36xbf16> to vector<8x4xbf16>
    %cst_12 = arith.constant dense<0.000000e+00> : vector<8x288xf32>
    %38 = tpu.matmul %37, %36, %cst_12 {dimension_numbers = #tpu.dot_dimension_numbers<[1], [0], [0], [1], [0, 0, 1, 1], [], []>} : vector<8x4xbf16>, vector<4x288xbf16>, vector<8x288xf32> -> vector<8x288xf32>
    %39 = arith.addf %35, %38 : vector<8x288xf32>
    %c0_13 = arith.constant 0 : index
    %c0_14 = arith.constant 0 : index
    %40 = vector.load %arg3[%c0_13, %c0_14] : memref<8x1xf32, #tpu.memory_space<vmem>>, vector<8x1xf32>
    %41 = vector.broadcast %40 : vector<8x1xf32> to vector<8x288xf32>
    %42 = arith.addf %39, %41 : vector<8x288xf32>
    %cst_15 = arith.constant 0.000000e+00 : f32
    %43 = vector.broadcast %cst_15 : f32 to vector<8x288xf32>
    %44 = arith.maximumf %42, %43 : vector<8x288xf32>
    %45 = arith.truncf %44 : vector<8x288xf32> to vector<8x288xbf16>
    %c0_16 = arith.constant 0 : index
    %c0_17 = arith.constant 0 : index
    %46 = vector.load %arg4[%c0_16, %c0_17] : memref<288x1xbf16, #tpu.memory_space<vmem>>, vector<288x1xbf16>
    %cst_18 = arith.constant dense<0.000000e+00> : vector<8x1xf32>
    %47 = tpu.matmul %45, %46, %cst_18 {dimension_numbers = #tpu.dot_dimension_numbers<[1], [0], [0], [1], [0, 0, 1, 1], [], []>} : vector<8x288xbf16>, vector<288x1xbf16>, vector<8x1xf32> -> vector<8x1xf32>
    %c0_19 = arith.constant 0 : index
    %c0_20 = arith.constant 0 : index
    %48 = vector.load %arg10[%c0_19, %c0_20] : memref<8x2xf32, #tpu.memory_space<vmem>>, vector<8x1xf32>
    tpu.vector_store %arg10[%c0_19, %c0_20], %47 {strides = array<i32>} : memref<8x2xf32, #tpu.memory_space<vmem>>, vector<8x1xf32>,
    %c1 = arith.constant 1 : index
    %c0_21 = arith.constant 0 : index
    %c0_22 = arith.constant 0 : index
    %49 = vector.load %arg1[%c1, %c0_21, %c0_22] : memref<2x4x384xbf16, #tpu.memory_space<vmem>>, vector<1x4x384xbf16>
    %50 = vector.shape_cast %49 : vector<1x4x384xbf16> to vector<4x384xbf16>
    %cst_23 = arith.constant 0.000000e+00 : f32
    %51 = vector.broadcast %cst_23 : f32 to vector<8x288xf32>
    %52 = vector.extract_strided_slice %50 {offsets = [0, 0], sizes = [4, 288], strides = [1, 1]} : vector<4x384xbf16> to vector<4x288xbf16>
    %53 = vector.extract_strided_slice %0 {offsets = [0, 0], sizes = [8, 4], strides = [1, 1]} : vector<8x36xbf16> to vector<8x4xbf16>
    %cst_24 = arith.constant dense<0.000000e+00> : vector<8x288xf32>
    %54 = tpu.matmul %53, %52, %cst_24 {dimension_numbers = #tpu.dot_dimension_numbers<[1], [0], [0], [1], [0, 0, 1, 1], [], []>} : vector<8x4xbf16>, vector<4x288xbf16>, vector<8x288xf32> -> vector<8x288xf32>
    %55 = arith.addf %51, %54 : vector<8x288xf32>
    %56 = vector.extract_strided_slice %50 {offsets = [0, 1], sizes = [4, 288], strides = [1, 1]} : vector<4x384xbf16> to vector<4x288xbf16>
    %57 = vector.extract_strided_slice %0 {offsets = [0, 4], sizes = [8, 4], strides = [1, 1]} : vector<8x36xbf16> to vector<8x4xbf16>
    %cst_25 = arith.constant dense<0.000000e+00> : vector<8x288xf32>
    %58 = tpu.matmul %57, %56, %cst_25 {dimension_numbers = #tpu.dot_dimension_numbers<[1], [0], [0], [1], [0, 0, 1, 1], [], []>} : vector<8x4xbf16>, vector<4x288xbf16>, vector<8x288xf32> -> vector<8x288xf32>
    %59 = arith.addf %55, %58 : vector<8x288xf32>
    %60 = vector.extract_strided_slice %50 {offsets = [0, 2], sizes = [4, 288], strides = [1, 1]} : vector<4x384xbf16> to vector<4x288xbf16>
    %61 = vector.extract_strided_slice %0 {offsets = [0, 8], sizes = [8, 4], strides = [1, 1]} : vector<8x36xbf16> to vector<8x4xbf16>
    %cst_26 = arith.constant dense<0.000000e+00> : vector<8x288xf32>
    %62 = tpu.matmul %61, %60, %cst_26 {dimension_numbers = #tpu.dot_dimension_numbers<[1], [0], [0], [1], [0, 0, 1, 1], [], []>} : vector<8x4xbf16>, vector<4x288xbf16>, vector<8x288xf32> -> vector<8x288xf32>
    %63 = arith.addf %59, %62 : vector<8x288xf32>
    %64 = vector.extract_strided_slice %50 {offsets = [0, 18], sizes = [4, 288], strides = [1, 1]} : vector<4x384xbf16> to vector<4x288xbf16>
    %65 = vector.extract_strided_slice %0 {offsets = [0, 12], sizes = [8, 4], strides = [1, 1]} : vector<8x36xbf16> to vector<8x4xbf16>
    %cst_27 = arith.constant dense<0.000000e+00> : vector<8x288xf32>
    %66 = tpu.matmul %65, %64, %cst_27 {dimension_numbers = #tpu.dot_dimension_numbers<[1], [0], [0], [1], [0, 0, 1, 1], [], []>} : vector<8x4xbf16>, vector<4x288xbf16>, vector<8x288xf32> -> vector<8x288xf32>
    %67 = arith.addf %63, %66 : vector<8x288xf32>
    %68 = vector.extract_strided_slice %50 {offsets = [0, 19], sizes = [4, 288], strides = [1, 1]} : vector<4x384xbf16> to vector<4x288xbf16>
    %69 = vector.extract_strided_slice %0 {offsets = [0, 16], sizes = [8, 4], strides = [1, 1]} : vector<8x36xbf16> to vector<8x4xbf16>
    %cst_28 = arith.constant dense<0.000000e+00> : vector<8x288xf32>
    %70 = tpu.matmul %69, %68, %cst_28 {dimension_numbers = #tpu.dot_dimension_numbers<[1], [0], [0], [1], [0, 0, 1, 1], [], []>} : vector<8x4xbf16>, vector<4x288xbf16>, vector<8x288xf32> -> vector<8x288xf32>
    %71 = arith.addf %67, %70 : vector<8x288xf32>
    %72 = vector.extract_strided_slice %50 {offsets = [0, 20], sizes = [4, 288], strides = [1, 1]} : vector<4x384xbf16> to vector<4x288xbf16>
    %73 = vector.extract_strided_slice %0 {offsets = [0, 20], sizes = [8, 4], strides = [1, 1]} : vector<8x36xbf16> to vector<8x4xbf16>
    %cst_29 = arith.constant dense<0.000000e+00> : vector<8x288xf32>
    %74 = tpu.matmul %73, %72, %cst_29 {dimension_numbers = #tpu.dot_dimension_numbers<[1], [0], [0], [1], [0, 0, 1, 1], [], []>} : vector<8x4xbf16>, vector<4x288xbf16>, vector<8x288xf32> -> vector<8x288xf32>
    %75 = arith.addf %71, %74 : vector<8x288xf32>
    %76 = vector.extract_strided_slice %50 {offsets = [0, 36], sizes = [4, 288], strides = [1, 1]} : vector<4x384xbf16> to vector<4x288xbf16>
    %77 = vector.extract_strided_slice %0 {offsets = [0, 24], sizes = [8, 4], strides = [1, 1]} : vector<8x36xbf16> to vector<8x4xbf16>
    %cst_30 = arith.constant dense<0.000000e+00> : vector<8x288xf32>
    %78 = tpu.matmul %77, %76, %cst_30 {dimension_numbers = #tpu.dot_dimension_numbers<[1], [0], [0], [1], [0, 0, 1, 1], [], []>} : vector<8x4xbf16>, vector<4x288xbf16>, vector<8x288xf32> -> vector<8x288xf32>
    %79 = arith.addf %75, %78 : vector<8x288xf32>
    %80 = vector.extract_strided_slice %50 {offsets = [0, 37], sizes = [4, 288], strides = [1, 1]} : vector<4x384xbf16> to vector<4x288xbf16>
    %81 = vector.extract_strided_slice %0 {offsets = [0, 28], sizes = [8, 4], strides = [1, 1]} : vector<8x36xbf16> to vector<8x4xbf16>
    %cst_31 = arith.constant dense<0.000000e+00> : vector<8x288xf32>
    %82 = tpu.matmul %81, %80, %cst_31 {dimension_numbers = #tpu.dot_dimension_numbers<[1], [0], [0], [1], [0, 0, 1, 1], [], []>} : vector<8x4xbf16>, vector<4x288xbf16>, vector<8x288xf32> -> vector<8x288xf32>
    %83 = arith.addf %79, %82 : vector<8x288xf32>
    %84 = vector.extract_strided_slice %50 {offsets = [0, 38], sizes = [4, 288], strides = [1, 1]} : vector<4x384xbf16> to vector<4x288xbf16>
    %85 = vector.extract_strided_slice %0 {offsets = [0, 32], sizes = [8, 4], strides = [1, 1]} : vector<8x36xbf16> to vector<8x4xbf16>
    %cst_32 = arith.constant dense<0.000000e+00> : vector<8x288xf32>
    %86 = tpu.matmul %85, %84, %cst_32 {dimension_numbers = #tpu.dot_dimension_numbers<[1], [0], [0], [1], [0, 0, 1, 1], [], []>} : vector<8x4xbf16>, vector<4x288xbf16>, vector<8x288xf32> -> vector<8x288xf32>
    %87 = arith.addf %83, %86 : vector<8x288xf32>
    %c0_33 = arith.constant 0 : index
    %c0_34 = arith.constant 0 : index
    %88 = vector.load %arg3[%c0_33, %c0_34] : memref<8x1xf32, #tpu.memory_space<vmem>>, vector<8x1xf32>
    %89 = vector.broadcast %88 : vector<8x1xf32> to vector<8x288xf32>
    %90 = arith.addf %87, %89 : vector<8x288xf32>
    %cst_35 = arith.constant 0.000000e+00 : f32
    %91 = vector.broadcast %cst_35 : f32 to vector<8x288xf32>
    %92 = arith.maximumf %90, %91 : vector<8x288xf32>
    %93 = arith.truncf %92 : vector<8x288xf32> to vector<8x288xbf16>
    %c0_36 = arith.constant 0 : index
    %c0_37 = arith.constant 0 : index
    %94 = vector.load %arg4[%c0_36, %c0_37] : memref<288x1xbf16, #tpu.memory_space<vmem>>, vector<288x1xbf16>
    %cst_38 = arith.constant dense<0.000000e+00> : vector<8x1xf32>
    %95 = tpu.matmul %93, %94, %cst_38 {dimension_numbers = #tpu.dot_dimension_numbers<[1], [0], [0], [1], [0, 0, 1, 1], [], []>} : vector<8x288xbf16>, vector<288x1xbf16>, vector<8x1xf32> -> vector<8x1xf32>
    %c0_39 = arith.constant 0 : index
    %c1_40 = arith.constant 1 : index
    %96 = vector.load %arg10[%c0_39, %c1_40] : memref<8x2xf32, #tpu.memory_space<vmem>>, vector<8x1xf32>
    tpu.vector_store %arg10[%c0_39, %c1_40], %95 {strides = array<i32>} : memref<8x2xf32, #tpu.memory_space<vmem>>, vector<8x1xf32>,
    %c0_41 = arith.constant 0 : index
    %c0_42 = arith.constant 0 : index
    %97 = vector.load %arg10[%c0_41, %c0_42] : memref<8x2xf32, #tpu.memory_space<vmem>>, vector<8x2xf32>
    %c0_43 = arith.constant 0 : index
    %c0_44 = arith.constant 0 : index
    %98 = vector.load %arg5[%c0_43, %c0_44] : memref<32x8xf32, #tpu.memory_space<vmem>>, vector<32x8xf32>
    %cst_45 = arith.constant dense<0.000000e+00> : vector<32x2xf32>
    %99 = tpu.matmul %98, %97, %cst_45 {dimension_numbers = #tpu.dot_dimension_numbers<[1], [0], [0], [1], [0, 0, 1, 1], [], []>} : vector<32x8xf32>, vector<8x2xf32>, vector<32x2xf32> -> vector<32x2xf32>
    %c0_46 = arith.constant 0 : index
    %c0_47 = arith.constant 0 : index
    %100 = vector.load %arg6[%c0_46, %c0_47] : memref<32x1xf32, #tpu.memory_space<vmem>>, vector<32x1xf32>
    %101 = vector.broadcast %100 : vector<32x1xf32> to vector<32x2xf32>
    %102 = arith.addf %99, %101 : vector<32x2xf32>
    %cst_48 = arith.constant 0.000000e+00 : f32
    %103 = vector.broadcast %cst_48 : f32 to vector<32x2xf32>
    %104 = arith.maximumf %102, %103 : vector<32x2xf32>
    %c0_49 = arith.constant 0 : index
    %c0_50 = arith.constant 0 : index
    %105 = vector.load %arg7[%c0_49, %c0_50] : memref<10x32xf32, #tpu.memory_space<vmem>>, vector<10x32xf32>
    %cst_51 = arith.constant dense<0.000000e+00> : vector<10x2xf32>
    %106 = tpu.matmul %105, %104, %cst_51 {dimension_numbers = #tpu.dot_dimension_numbers<[1], [0], [0], [1], [0, 0, 1, 1], [], []>} : vector<10x32xf32>, vector<32x2xf32>, vector<10x2xf32> -> vector<10x2xf32>
    %c0_52 = arith.constant 0 : index
    %c0_53 = arith.constant 0 : index
    %107 = vector.load %arg8[%c0_52, %c0_53] : memref<10x1xf32, #tpu.memory_space<vmem>>, vector<10x1xf32>
    %108 = vector.broadcast %107 : vector<10x1xf32> to vector<10x2xf32>
    %109 = arith.addf %106, %108 : vector<10x2xf32>
    %c0_54 = arith.constant 0 : index
    %c0_55 = arith.constant 0 : index
    %c0_56 = arith.constant 0 : index
    %110 = vector.load %arg9[%c0_54, %c0_55, %c0_56] : memref<1x10x2xf32, #tpu.memory_space<vmem>>, vector<1x10x2xf32>
    %111 = vector.shape_cast %110 : vector<1x10x2xf32> to vector<10x2xf32>
    %112 = vector.shape_cast %109 : vector<10x2xf32> to vector<1x10x2xf32>
    tpu.vector_store %arg9[%c0_54, %c0_55, %c0_56], %112 {strides = array<i32>} : memref<1x10x2xf32, #tpu.memory_space<vmem>>, vector<1x10x2xf32>,
    return
  }
  func.func @transform_0(%arg0: i32) -> (i32, i32, i32) {
    %c0_i32 = arith.constant 0 : i32
    %c0_i32_0 = arith.constant 0 : i32
    %c0_i32_1 = arith.constant 0 : i32
    return %arg0, %c0_i32, %c0_i32_0 : i32, i32, i32
  }
  func.func @transform_1(%arg0: i32) -> (i32, i32) {
    %c0_i32 = arith.constant 0 : i32
    %c0_i32_0 = arith.constant 0 : i32
    %c0_i32_1 = arith.constant 0 : i32
    return %c0_i32, %c0_i32_0 : i32, i32
  }
  func.func @transform_2(%arg0: i32) -> (i32, i32) {
    %c0_i32 = arith.constant 0 : i32
    %c0_i32_0 = arith.constant 0 : i32
    %c0_i32_1 = arith.constant 0 : i32
    return %c0_i32, %c0_i32_0 : i32, i32
  }
  func.func @transform_3(%arg0: i32) -> (i32, i32) {
    %c0_i32 = arith.constant 0 : i32
    %c0_i32_0 = arith.constant 0 : i32
    %c0_i32_1 = arith.constant 0 : i32
    return %c0_i32, %c0_i32_0 : i32, i32
  }
  func.func @transform_4(%arg0: i32) -> (i32, i32) {
    %c0_i32 = arith.constant 0 : i32
    %c0_i32_0 = arith.constant 0 : i32
    %c0_i32_1 = arith.constant 0 : i32
    return %c0_i32, %c0_i32_0 : i32, i32
  }
  func.func @transform_5(%arg0: i32) -> (i32, i32) {
    %c0_i32 = arith.constant 0 : i32
    %c0_i32_0 = arith.constant 0 : i32
    %c0_i32_1 = arith.constant 0 : i32
    return %c0_i32, %c0_i32_0 : i32, i32
  }
  func.func @transform_6(%arg0: i32) -> (i32, i32) {
    %c0_i32 = arith.constant 0 : i32
    %c0_i32_0 = arith.constant 0 : i32
    %c0_i32_1 = arith.constant 0 : i32
    return %c0_i32, %c0_i32_0 : i32, i32
  }
  func.func @transform_7(%arg0: i32) -> (i32, i32) {
    %c0_i32 = arith.constant 0 : i32
    %c0_i32_0 = arith.constant 0 : i32
    %c0_i32_1 = arith.constant 0 : i32
    return %c0_i32, %c0_i32_0 : i32, i32
  }
  func.func @transform_8(%arg0: i32) -> (i32, i32, i32) {
    %c0_i32 = arith.constant 0 : i32
    %c0_i32_0 = arith.constant 0 : i32
    %c0_i32_1 = arith.constant 0 : i32
    return %arg0, %c0_i32, %c0_i32_0 : i32, i32, i32
  }
}

</mosaic_0001>

<bundles_post_ra>
// kernel: tpu_custom_call.1
= control target key start
LH: loop header
LB: loop body
LE: loop exit
PB: predicated region body
PF: predicated region fallthrough
CT: control target
= control target key end

     0   :  { %v42_v0 = vlaneseq  ;;  %v3050_v2 = vmov 1983009808   ;;  %v3051_v4 = vmov 0.0   ;;  %vm3052_vm0 = vmmov 0   ;;  %s3054_s9 = smov 126   ;;  %s3055_s10 = smov 127   ;;  %s3682_s0 = inlined_call_operand.vmem [shape: bf16[2,4,384], index: 0, kind: input, shape index: {}]   ;;  %s3683_s1 = inlined_call_operand.vmem [shape: bf16[8,36], index: 1, kind: input, shape index: {}]   ;;  %s3684_s2 = inlined_call_operand.vmem [shape: f32[8,1], index: 2, kind: input, shape index: {}]   ;;  %s3685_s5 = inlined_call_operand.vmem [shape: f32[32,1], index: 5, kind: input, shape index: {}]   ;;  %s3686_s7 = inlined_call_operand.vmem [shape: f32[10,1], index: 7, kind: input, shape index: {}]   ;;  %s3687_s3 = inlined_call_operand.vmem [shape: bf16[288,1], index: 3, kind: input, shape index: {}]   ;;  %s3688_s4 = inlined_call_operand.vmem [shape: f32[32,8], index: 4, kind: input, shape index: {}]   ;;  %s3689_s6 = inlined_call_operand.vmem [shape: f32[10,32], index: 6, kind: input, shape index: {}]   ;;  %s3690_s8 = inlined_call_operand.vmem [shape: f32[1,10,2], index: 8, kind: output, shape index: {}]  }
   0x1   :  { %v31_v1 = vld [vmem:[%s3682_s0] sm:$0x3f]  ;;  %v40_v3 = vunpack.c.l.s4 %v3050_v2  ;;  %2838 = vmatprep.subr.bf16.mxu1 %v3051_v4  ;;  %2840 = vmatprep.mubr.msk.bf16.mxu1 %vm3052_vm0, %v3051_v4  ;;  %v3053_v11 = vmov 0   ;;  %s3057_s11 = smov 120   ;;  %s3058_s12 = smov 116   ;;  %vm67_vm1 = vcmask 1041408  }
   0x2   :  { %v43_v5 = vshrl.u32 %v42_v0, 7  ;;  %v38_v6 = vcombine.high %v31_v1, %v31_v1  ;;  %v3126_v9 = vld [vmem:[%s3683_s1] sm:$0xf]  ;;  %109 = vmatprep.mubr.bf16.mxu0 %v3053_v11  ;;  %3009 = vset.pattern.permute.xlu0 %v3053_v11  ;;  %s3056_s1 = smov 124   ;;  %s3059_s13 = smov 110   ;;  %vm63_vm2 = vcmask 31744  }
   0x3   :  { %v41_v7 = vunpack.c.0.s8 %v40_v3  ;;  %v2641_v13 = vcombine.low %v3126_v9, %v3126_v9  ;;  %3010 = vset.pattern.permute.xlu1 %v3053_v11  ;;  %s3060_s14 = smov 109   ;;  %s3061_s15 = smov 112   ;;  %v2688_v15 = vld [vmem:[%s3682_s0 + $0x6] sm:$0x3f]  ;;  %v2414_v28 = vld [vmem:[%s3685_s5 + $0x10] sm:$0xff]  ;;  %vm60_vm3 = vcmask 1039360  }
   0x4   :  { %s3062_s16 = smov 108   ;;  %s3063_s17 = smov 92   ;;  %v1000_v16 = vld [vmem:[%s3684_s2] sm:$0xff]  ;;  %v1248_v17 = vcombine.high %v2688_v15, %v2688_v15  ;;  %vm259_vm4 = vcmask 1031168   ;;  %vm366_vm5 = vcmask 900096   ;;  %vm473_vm6 = vcmask 891904  }
   0x5   :  { %v3121_v8 = vsub.s32 %v41_v7, %v43_v5  ;;  %s3064_s18 = smov 104   ;;  %s3065_s19 = smov 91   ;;  %v2412_v24 = vld [vmem:[%s3685_s5] sm:$0xff]  ;;  %vm580_vm7 = vcmask 883712   ;;  %vm687_vm8 = vcmask 752640   ;;  %vm794_vm9 = vcmask 744448  }
   0x6   :  { %s3066_s20 = smov 100   ;;  %s3067_s21 = smov 90   ;;  %v2540_v33 = vld [vmem:[%s3686_s7] sm:$0xff]  ;;  %vm901_vm10 = vcmask 736256   ;;  %vm1159_vm11 = vcmask 261120   ;;  %vm1243_vm12 = vcmask 7168  }
   0x7   :  { %v3129_v10 = vrot.slane %v38_v6, %v3121_v8  ;;  %v3134_v12 = vrot.slane %v31_v1, %v3121_v8  ;;  %s3068_s22 = smov 96   ;;  %v3199_v18 = vrot.slane %v2688_v15, %v3121_v8  ;;  %v3202_v19 = vrot.slane %v1248_v17, %v3121_v8  ;;  %s3069_s29 = smov 1  }
   0x8   :  { %vm2436_vm13 = vcmask 64512   ;;  %vm2405_vm14 = vcmask 15368   ;;  %vm2635_vm15 = vcmask 9216  }
   0x9   :  { %257 = vrot.lane.b32.xlu1 %v3129_v10, %s3054_s9  ;;  %58 = vrot.lane.b32.xlu0 %v3129_v10, %s3055_s10  ;;  %v3147_v14 = vcombine.high %v3134_v12, %v3134_v12  ;;  %v3208_v20 = vcombine.high %v3199_v18, %v3199_v18  ;;  %v168_v25 = vsel %vm67_vm1, %v3129_v10, 0  ;;  %v162_v38 = vsel %vm67_vm1, %v3134_v12, 0 }
   0xd   :  { %54 = vrot.lane.b32.xlu1 %v3134_v12, %s3055_s10  ;;  %35 = vrot.lane.b32.xlu0 %v2641_v13, %s3056_s1 }
  0x11   :  { %251 = vrot.lane.b32.xlu1 %v2641_v13, %s3057_s11  ;;  %56 = vrot.lane.b32.xlu0 %v3147_v14, %s3055_s10 }
  0x15   :  { %358 = vrot.lane.b32.xlu1 %v2641_v13, %s3058_s12  ;;  %364 = vrot.lane.b32.xlu0 %v3129_v10, %s3059_s13 }
  0x19   :  { %253 = vrot.lane.b32.xlu1 %v3134_v12, %s3054_s9  ;;  %471 = vrot.lane.b32.xlu0 %v3129_v10, %s3060_s14 }
  0x1d   :  { %465 = vrot.lane.b32.xlu1 %v2641_v13, %s3061_s15  ;;  %255 = vrot.lane.b32.xlu0 %v3147_v14, %s3054_s9 }
  0x21   :  { %360 = vrot.lane.b32.xlu1 %v3134_v12, %s3059_s13  ;;  %578 = vrot.lane.b32.xlu0 %v3129_v10, %s3062_s16 }
  0x25   :  { %572 = vrot.lane.b32.xlu1 %v2641_v13, %s3062_s16  ;;  %362 = vrot.lane.b32.xlu0 %v3147_v14, %s3059_s13 }
  0x29   :  { %467 = vrot.lane.b32.xlu1 %v3134_v12, %s3060_s14  ;;  %685 = vrot.lane.b32.xlu0 %v3129_v10, %s3063_s17 }
  0x2d   :  { %679 = vrot.lane.b32.xlu1 %v2641_v13, %s3064_s18  ;;  %469 = vrot.lane.b32.xlu0 %v3147_v14, %s3060_s14 }
  0x31   :  { %574 = vrot.lane.b32.xlu1 %v3134_v12, %s3062_s16  ;;  %792 = vrot.lane.b32.xlu0 %v3129_v10, %s3065_s19 }
  0x35   :  { %786 = vrot.lane.b32.xlu1 %v2641_v13, %s3066_s20  ;;  %576 = vrot.lane.b32.xlu0 %v3147_v14, %s3062_s16 }
  0x39   :  { %681 = vrot.lane.b32.xlu1 %v3134_v12, %s3063_s17  ;;  %899 = vrot.lane.b32.xlu0 %v3129_v10, %s3067_s21 }
  0x3d   :  { %893 = vrot.lane.b32.xlu1 %v2641_v13, %s3068_s22  ;;  %683 = vrot.lane.b32.xlu0 %v3147_v14, %s3063_s17 }
  0x41   :  { %790 = vrot.lane.b32.xlu1 %v3147_v14, %s3065_s19  ;;  %788 = vrot.lane.b32.xlu0 %v3134_v12, %s3065_s19 }
  0x45   :  { %897 = vrot.lane.b32.xlu1 %v3147_v14, %s3067_s21  ;;  %895 = vrot.lane.b32.xlu0 %v3134_v12, %s3067_s21 }
  0x49   :  { %1003 = vperm.xlu0 %3009, %v1000_v16   ;;  %1264 = vrot.lane.b32.xlu1 %v3199_v18, %s3055_s10 }
  0x4d   :  { %1268 = vrot.lane.b32.xlu0 %v3202_v19, %s3055_s10  ;;  %1266 = vrot.lane.b32.xlu1 %v3208_v20, %s3055_s10 }
  0x51   :  { %1454 = vrot.lane.b32.xlu0 %v3208_v20, %s3054_s9  ;;  %1452 = vrot.lane.b32.xlu1 %v3199_v18, %s3054_s9 }
  0x55   :  { %1553 = vrot.lane.b32.xlu0 %v3199_v18, %s3059_s13  ;;  %1456 = vrot.lane.b32.xlu1 %v3202_v19, %s3054_s9 }
  0x59   :  { %1557 = vrot.lane.b32.xlu0 %v3202_v19, %s3059_s13  ;;  %1555 = vrot.lane.b32.xlu1 %v3208_v20, %s3059_s13 }
  0x5d   :  { %1656 = vrot.lane.b32.xlu0 %v3208_v20, %s3060_s14  ;;  %1654 = vrot.lane.b32.xlu1 %v3199_v18, %s3060_s14 }
  0x61   :  { %1755 = vrot.lane.b32.xlu0 %v3199_v18, %s3062_s16  ;;  %1658 = vrot.lane.b32.xlu1 %v3202_v19, %s3060_s14 }
  0x65   :  { %1759 = vrot.lane.b32.xlu0 %v3202_v19, %s3062_s16  ;;  %1757 = vrot.lane.b32.xlu1 %v3208_v20, %s3062_s16 }
  0x69   :  { %1858 = vrot.lane.b32.xlu0 %v3208_v20, %s3063_s17  ;;  %1856 = vrot.lane.b32.xlu1 %v3199_v18, %s3063_s17 }
  0x6d   :  { %1957 = vrot.lane.b32.xlu0 %v3199_v18, %s3065_s19  ;;  %1860 = vrot.lane.b32.xlu1 %v3202_v19, %s3063_s17 }
  0x71   :  { %1961 = vrot.lane.b32.xlu0 %v3202_v19, %s3065_s19  ;;  %1959 = vrot.lane.b32.xlu1 %v3208_v20, %s3065_s19 }
  0x75   :  { %2060 = vrot.lane.b32.xlu0 %v3208_v20, %s3067_s21  ;;  %2058 = vrot.lane.b32.xlu1 %v3199_v18, %s3067_s21 }
  0x79   :  { %2162 = vperm.xlu0 %3009, %v1000_v16   ;;  %2062 = vrot.lane.b32.xlu1 %v3202_v19, %s3067_s21 }
  0x7b   :  { %v258_v21 = vpop.permute.xlu1 %257  ;;  %v59_v22 = vpop.permute.xlu0 %58 }
  0x7c   :  { %v75_v23 = vsel %vm67_vm1, %v59_v22, 0  ;;  %v272_v35 = vsel %vm67_vm1, %v258_v21, 0 }
  0x7d   :  { %2839 = vmatpush3.bf16.msra.mxu1 %v75_v23  ;;  %2418 = vperm.xlu0 %3009, %v2412_v24  }
  0x7e   :  { %2844 = vmatprep.subr.bf16.mxu1 %v3051_v4 }
  0x7f   :  { %v55_v26 = vpop.permute.xlu1 %54  ;;  %v3263_v27 = vpop.permute.xlu0 %35 }
  0x80   :  { %2841 = vmatmul.mubr.msk.bf16.vlgmr.msra.gmra.mrb[0].mxu1 %vm63_vm2, %v3263_v27 }
  0x81   :  { %2845 = vmatpush3.bf16.msra.mxu1 %v168_v25  ;;  %2846 = vmatprep.mubr.msk.bf16.mxu1 %vm3052_vm0, %v3051_v4 }
  0x82   :  { %2850 = vmatprep.subr.bf16.mxu1 %v3051_v4  ;;  %2428 = vperm.xlu0 %3009, %v2414_v28  }
  0x83   :  { %v3273_v29 = vpop.permute.xlu1 %251  ;;  %v57_v30 = vpop.permute.xlu0 %56 }
  0x84   :  { %v62_v31 = vsel %vm60_vm3, %v57_v30, %v59_v22  ;;  %v61_v32 = vsel %vm60_vm3, %v55_v26, %v57_v30 }
  0x85   :  { %2642 = vmatprep.subr.msk.bf16.mxu0 %vm67_vm1, %v62_v31  ;;  %v69_v34 = vsel %vm67_vm1, %v61_v32, 0 }
  0x86   :  { %78 = vmatpush1.bf16.msra.mxu0 %v69_v34  ;;  %2544 = vperm.xlu0 %3009, %v2540_v33   ;;  %v3014_v34 = vld [vmem:[%s3687_s3 + $0x40] sm:$0xff]  }
  0x87   :  { %v3283_v36 = vpop.permute.xlu1 %358  ;;  %v365_v37 = vpop.permute.xlu0 %364  ;;  %2645 = vmatprep.subr.msk.bf16.mxu0 %vm67_vm1, %v3147_v14 }
  0x88   :  { %2847 = vmatmul.mubr.msk.bf16.vlgmr.msra.gmra.mrb[4].mxu1 %vm63_vm2, %v3126_v9  ;;  %v379_v41 = vsel %vm67_vm1, %v365_v37, 0 }
  0x89   :  { %2643 = vmatmul.mubr.msk.bf16.vlgmr.msra.gmra.mrb[0].mxu0 %vm63_vm2, %v3263_v27  ;;  %2851 = vmatpush3.bf16.msra.mxu1 %v272_v35  ;;  %v3015_v35 = vld [vmem:[%s3687_s3] sm:$0xff]  }
  0x8a   :  { %171 = vmatpush1.bf16.msra.mxu0 %v162_v38  ;;  %2852 = vmatprep.mubr.msk.bf16.mxu1 %vm3052_vm0, %v3051_v4  ;;  %v3017_v38 = vld [vmem:[%s3687_s3 + $0x8] sm:$0xff]  }
  0x8b   :  { %v254_v39 = vpop.permute.xlu1 %253  ;;  %v472_v40 = vpop.permute.xlu0 %471  ;;  %202 = vmatprep.mubr.bf16.mxu0 %v3053_v11  ;;  %2856 = vmatprep.subr.bf16.mxu1 %v3051_v4 }
  0x8c   :  { %v486_v49 = vsel %vm67_vm1, %v472_v40, 0 }
  0x8f   :  { %v3298_v42 = vpop.permute.xlu1 %465  ;;  %v256_v43 = vpop.permute.xlu0 %255 }
  0x90   :  { %v260_v44 = vsel %vm259_vm4, %v254_v39, %v256_v43  ;;  %v261_v45 = vsel %vm259_vm4, %v256_v43, %v258_v21  ;;  %2853 = vmatmul.mubr.msk.bf16.vlgmr.msra.gmra.mrb[8].mxu1 %vm63_vm2, %v3273_v29  ;;  %v3018_v39 = vld [vmem:[%s3687_s3 + $0x50] sm:$0xff]   ;;  %v3021_v43 = vld [vmem:[%s3687_s3 + $0x18] sm:$0xff]  }
  0x91   :  { %v266_v46 = vsel %vm67_vm1, %v260_v44, 0  ;;  %2646 = vmatmul.mubr.msk.bf16.vlgmr.msra.gmra.mrb[4].mxu0 %vm63_vm2, %v3126_v9  ;;  %2648 = vmatprep.subr.msk.bf16.mxu0 %vm67_vm1, %v261_v45  ;;  %v3022_v44 = vld [vmem:[%s3687_s3 + $0x80] sm:$0xff]  }
  0x92   :  { %2857 = vmatpush3.bf16.msra.mxu1 %v379_v41  ;;  %275 = vmatpush1.bf16.msra.mxu0 %v266_v46  ;;  %v3020_v41 = vld [vmem:[%s3687_s3 + $0x58] sm:$0xff]   ;;  %v3023_v46 = vld [vmem:[%s3687_s3 + $0x60] sm:$0xff]  }
  0x93   :  { %v361_v47 = vpop.permute.xlu1 %360  ;;  %v579_v48 = vpop.permute.xlu0 %578  ;;  %2858 = vmatprep.mubr.msk.bf16.mxu1 %vm3052_vm0, %v3051_v4  ;;  %306 = vmatprep.mubr.bf16.mxu0 %v3053_v11 }
  0x94   :  { %2862 = vmatprep.subr.bf16.mxu1 %v3051_v4  ;;  %v593_v57 = vsel %vm67_vm1, %v579_v48, 0 }
  0x97   :  { %v3313_v50 = vpop.permute.xlu1 %572  ;;  %v363_v51 = vpop.permute.xlu0 %362 }
  0x98   :  { %v367_v52 = vsel %vm366_vm5, %v361_v47, %v363_v51  ;;  %v368_v53 = vsel %vm366_vm5, %v363_v51, %v365_v37  ;;  %2859 = vmatmul.mubr.msk.bf16.vlgmr.msra.gmra.mrb[12].mxu1 %vm63_vm2, %v3283_v36  ;;  %v3016_v37 = vld [vmem:[%s3687_s3 + $0x48] sm:$0xff]  }
  0x99   :  { %v373_v54 = vsel %vm67_vm1, %v367_v52, 0  ;;  %2649 = vmatmul.mubr.msk.bf16.vlgmr.msra.gmra.mrb[8].mxu0 %vm63_vm2, %v3273_v29  ;;  %2651 = vmatprep.subr.msk.bf16.mxu0 %vm67_vm1, %v368_v53  ;;  %v3026_v51 = vld [vmem:[%s3687_s3 + $0x68] sm:$0xff]  }
  0x9a   :  { %2863 = vmatpush3.bf16.msra.mxu1 %v486_v49  ;;  %382 = vmatpush1.bf16.msra.mxu0 %v373_v54  ;;  %v3025_v49 = vld [vmem:[%s3687_s3 + $0x88] sm:$0xff]  }
  0x9b   :  { %v468_v55 = vpop.permute.xlu1 %467  ;;  %v686_v56 = vpop.permute.xlu0 %685  ;;  %2864 = vmatprep.mubr.msk.bf16.mxu1 %vm3052_vm0, %v3051_v4  ;;  %413 = vmatprep.mubr.bf16.mxu0 %v3053_v11  ;;  %v3027_v54 = vld [vmem:[%s3687_s3 + $0x28] sm:$0xff]  }
  0x9c   :  { %2868 = vmatprep.subr.bf16.mxu1 %v3051_v4  ;;  %v700_v1 = vsel %vm67_vm1, %v686_v56, 0 }
  0x9f   :  { %v3328_v58 = vpop.permute.xlu1 %679  ;;  %v470_v59 = vpop.permute.xlu0 %469 }
  0xa0   :  { %v474_v60 = vsel %vm473_vm6, %v468_v55, %v470_v59  ;;  %v475_v61 = vsel %vm473_vm6, %v470_v59, %v472_v40  ;;  %2865 = vmatmul.mubr.msk.bf16.vlgmr.msra.gmra.mrb[16].mxu1 %vm63_vm2, %v3298_v42  ;;  %v3019_v40 = vld [vmem:[%s3687_s3 + $0x10] sm:$0xff]  }
  0xa1   :  { %v480_v62 = vsel %vm67_vm1, %v474_v60, 0  ;;  %2652 = vmatmul.mubr.msk.bf16.vlgmr.msra.gmra.mrb[12].mxu0 %vm63_vm2, %v3283_v36  ;;  %2654 = vmatprep.subr.msk.bf16.mxu0 %vm67_vm1, %v475_v61  ;;  %v3029_v59 = vld [vmem:[%s3687_s3 + $0x30] sm:$0xff]   ;;  %v3030_v60 = vld [vmem:[%s3687_s3 + $0x78] sm:$0xff]  }
  0xa2   :  { %2869 = vmatpush3.bf16.msra.mxu1 %v593_v57  ;;  %489 = vmatpush1.bf16.msra.mxu0 %v480_v62  ;;  %v3028_v57 = vld [vmem:[%s3687_s3 + $0x70] sm:$0xff]   ;;  %v3031_v61 = vld [vmem:[%s3687_s3 + $0x38] sm:$0xff]  }
  0xa3   :  { %v575_v63 = vpop.permute.xlu1 %574  ;;  %v793_v0 = vpop.permute.xlu0 %792  ;;  %2870 = vmatprep.mubr.msk.bf16.mxu1 %vm3052_vm0, %v3051_v4  ;;  %520 = vmatprep.mubr.bf16.mxu0 %v3053_v11 }
  0xa4   :  { %2874 = vmatprep.subr.bf16.mxu1 %v3051_v4  ;;  %v807_v12 = vsel %vm67_vm1, %v793_v0, 0 }
  0xa7   :  { %v3343_v2 = vpop.permute.xlu1 %786  ;;  %v577_v3 = vpop.permute.xlu0 %576 }
  0xa8   :  { %v581_v5 = vsel %vm580_vm7, %v575_v63, %v577_v3  ;;  %v582_v6 = vsel %vm580_vm7, %v577_v3, %v579_v48  ;;  %2871 = vmatmul.mubr.msk.bf16.vlgmr.msra.gmra.mrb[20].mxu1 %vm63_vm2, %v3313_v50  ;;  %v3024_v48 = vld [vmem:[%s3687_s3 + $0x20] sm:$0xff]  }
  0xa9   :  { %v587_v7 = vsel %vm67_vm1, %v581_v5, 0  ;;  %2655 = vmatmul.mubr.msk.bf16.vlgmr.msra.gmra.mrb[16].mxu0 %vm63_vm2, %v3298_v42  ;;  %2657 = vmatprep.subr.msk.bf16.mxu0 %vm67_vm1, %v582_v6 }
  0xaa   :  { %2875 = vmatpush3.bf16.msra.mxu1 %v700_v1  ;;  %596 = vmatpush1.bf16.msra.mxu0 %v587_v7 }
  0xab   :  { %v682_v8 = vpop.permute.xlu1 %681  ;;  %v900_v10 = vpop.permute.xlu0 %899  ;;  %2876 = vmatprep.mubr.msk.bf16.mxu1 %vm3052_vm0, %v3051_v4  ;;  %627 = vmatprep.mubr.bf16.mxu0 %v3053_v11 }
  0xac   :  { %2880 = vmatprep.subr.bf16.mxu1 %v3051_v4  ;;  %v914_v25 = vsel %vm67_vm1, %v900_v10, 0 }
  0xaf   :  { %v3358_v13 = vpop.permute.xlu1 %893  ;;  %v684_v14 = vpop.permute.xlu0 %683 }
  0xb0   :  { %v688_v15 = vsel %vm687_vm8, %v682_v8, %v684_v14  ;;  %v689_v16 = vsel %vm687_vm8, %v684_v14, %v686_v56  ;;  %2877 = vmatmul.mubr.msk.bf16.vlgmr.msra.gmra.mrb[24].mxu1 %vm63_vm2, %v3328_v58 }
  0xb1   :  { %v694_v17 = vsel %vm67_vm1, %v688_v15, 0  ;;  %2658 = vmatmul.mubr.msk.bf16.vlgmr.msra.gmra.mrb[20].mxu0 %vm63_vm2, %v3313_v50  ;;  %2660 = vmatprep.subr.msk.bf16.mxu0 %vm67_vm1, %v689_v16 }
  0xb2   :  { %2881 = vmatpush3.bf16.msra.mxu1 %v807_v12  ;;  %703 = vmatpush1.bf16.msra.mxu0 %v694_v17 }
  0xb3   :  { %v791_v21 = vpop.permute.xlu1 %790  ;;  %v789_v22 = vpop.permute.xlu0 %788  ;;  %2882 = vmatprep.mubr.msk.bf16.mxu1 %vm3052_vm0, %v3051_v4  ;;  %734 = vmatprep.mubr.bf16.mxu0 %v3053_v11 }
  0xb4   :  { %v796_v23 = vsel %vm794_vm9, %v791_v21, %v793_v0  ;;  %v795_v24 = vsel %vm794_vm9, %v789_v22, %v791_v21  ;;  %2886 = vmatprep.subr.bf16.mxu1 %v3051_v4 }
  0xb5   :  { %2663 = vmatprep.subr.msk.bf16.mxu0 %vm67_vm1, %v796_v23  ;;  %v801_v26 = vsel %vm67_vm1, %v795_v24, 0 }
  0xb7   :  { %v898_v28 = vpop.permute.xlu1 %897  ;;  %v896_v31 = vpop.permute.xlu0 %895 }
  0xb8   :  { %2883 = vmatmul.mubr.msk.bf16.vlgmr.msra.gmra.mrb[28].mxu1 %vm63_vm2, %v3343_v2  ;;  %v903_v30 = vsel %vm901_vm10, %v898_v28, %v900_v10  ;;  %v902_v32 = vsel %vm901_vm10, %v896_v31, %v898_v28 }
  0xb9   :  { %2661 = vmatmul.mubr.msk.bf16.vlgmr.msra.gmra.mrb[24].mxu0 %vm63_vm2, %v3328_v58  ;;  %2887 = vmatpush3.bf16.msra.mxu1 %v914_v25  ;;  %v908_v33 = vsel %vm67_vm1, %v902_v32, 0 }
  0xba   :  { %810 = vmatpush1.bf16.msra.mxu0 %v801_v26  ;;  %2888 = vmatprep.mubr.msk.bf16.mxu1 %vm3052_vm0, %v3051_v4 }
  0xbb   :  { %2666 = vmatprep.subr.msk.bf16.mxu0 %vm67_vm1, %v903_v30  ;;  %841 = vmatprep.mubr.bf16.mxu0 %v3053_v11  ;;  %v1265_v47 = vpop.permute.xlu1 %1264 }
  0xbc   :  { %2892 = vmatprep.subr.bf16.mxu1 %v3051_v4 }
  0xbf   :  { %v1267_v53 = vpop.permute.xlu1 %1266 }
  0xc0   :  { %2889 = vmatmul.mubr.msk.bf16.vlgmr.msra.gmra.mrb[32].mxu1 %vm63_vm2, %v3358_v13  ;;  %v3446_v55 = vsel %vm60_vm3, %v1265_v47, %v1267_v53 }
  0xc1   :  { %2664 = vmatmul.mubr.msk.bf16.vlgmr.msra.gmra.mrb[28].mxu0 %vm63_vm2, %v3343_v2  ;;  %2896 = vmatprep.mubr.msk.bf16.mxu1 %vm3052_vm0, %v3051_v4 }
  0xc2   :  { %917 = vmatpush1.bf16.msra.mxu0 %v908_v33  ;;  %948 = vmatprep.mubr.bf16.mxu0 %v3053_v11 }
  0xc3   :  { %2759 = vmatprep.subr.bf16.mxu0 %v3014_v34  ;;  %2893 = vmatpush3.bf16.msra.mxu1 %v3022_v44 }
  0xc4   :  { %2894 = vmatprep.subr.bf16.mxu1 %v3051_v4 }
  0xc7   :  { %2895 = vmatpush3.bf16.msra.mxu1 %v3025_v49 }
  0xc8   :  { %v3425_v45 = vpop.permute.xlu0 %1003 }
  0xc9   :  { %2667 = vmatmul.mubr.msk.bf16.vlgmr.msra.gmra.mrb[32].mxu0 %vm63_vm2, %v3358_v13 }
  0xca   :  { %2760 = vmatpush3.bf16.msra.mxu0 %v3015_v35 }
  0xcb   :  { %2761 = vmatprep.subr.bf16.mxu0 %v3016_v37 }
  0xcc   :  { %v3440_v52 = vpop.permute.xlu0 %1268 }
  0xcd   :  { %v1271_v56 = vsel %vm60_vm3, %v1267_v53, %v3440_v52 }
  0xce   :  { %2762 = vmatpush3.bf16.msra.mxu0 %v3017_v38  ;;  %2689 = vmatprep.subr.msk.bf16.mxu1 %vm67_vm1, %v1271_v56 }
  0xcf   :  { %2763 = vmatprep.subr.bf16.mxu0 %v3018_v39 }
  0xd2   :  { %2764 = vmatpush3.bf16.msra.mxu0 %v3019_v40 }
  0xd3   :  { %2765 = vmatprep.subr.bf16.mxu0 %v3020_v41 }
  0xd6   :  { %2766 = vmatpush3.bf16.msra.mxu0 %v3021_v43 }
  0xd7   :  { %2767 = vmatprep.subr.bf16.mxu0 %v3023_v46 }
  0xda   :  { %2768 = vmatpush3.bf16.msra.mxu0 %v3024_v48 }
  0xdb   :  { %2769 = vmatprep.subr.bf16.mxu0 %v3026_v51 }
  0xde   :  { %2770 = vmatpush3.bf16.msra.mxu0 %v3027_v54 }
  0xdf   :  { %2771 = vmatprep.subr.bf16.mxu0 %v3028_v57 }
  0xe2   :  { %2772 = vmatpush3.bf16.msra.mxu0 %v3029_v59 }
  0xe3   :  { %2773 = vmatprep.subr.bf16.mxu0 %v3030_v60 }
  0xe6   :  { %2774 = vmatpush3.bf16.msra.mxu0 %v3031_v61 }
  0xe7   :  { %2906 = vmatprep.subr.bf16.mxu0 %v3051_v4 }
 0x153   :  { %v152_v62 = vpop.f32.mrb[0].mxu1 }
 0x154   :  { %v2842_v63 = vpop.f32.mrb[1].mxu1 }
 0x155   :  { %v155_v0 = vpop.f32.mrb[2].mxu1 }
 0x156   :  { %v2843_v1 = vpop.f32.mrb[3].mxu1 }
 0x15b   :  { %v245_v3 = vpop.f32.mrb[4].mxu1 }
 0x15c   :  { %v246_v5 = vadd.f32 %v245_v3, %v152_v62  ;;  %v111_v6 = vpop.f32.mrb[0].mxu0  ;;  %v2848_v7 = vpop.f32.mrb[5].mxu1 }
 0x15d   :  { %v113_v8 = vpop.f32.mrb[1].mxu0  ;;  %v248_v10 = vpop.f32.mrb[6].mxu1 }
 0x15e   :  { %v115_v12 = vpop.f32.mrb[2].mxu0  ;;  %v2849_v14 = vpop.f32.mrb[7].mxu1 }
 0x15f   :  { %v116_v15 = vpop.f32.mrb[3].mxu0 }
 0x163   :  { %v349_v16 = vpop.f32.mrb[8].mxu1 }
 0x164   :  { %v357_v17 = vadd.f32 %v349_v16, %v246_v5  ;;  %v204_v21 = vpop.f32.mrb[4].mxu0  ;;  %v2854_v22 = vpop.f32.mrb[9].mxu1 }
 0x165   :  { %v205_v23 = vadd.f32 %v204_v21, %v111_v6  ;;  %v206_v24 = vpop.f32.mrb[5].mxu0  ;;  %v352_v25 = vpop.f32.mrb[10].mxu1 }
 0x166   :  { %v207_v26 = vadd.f32 %v206_v24, %v113_v8  ;;  %v2855_v28 = vpop.f32.mrb[11].mxu1  ;;  %v208_v30 = vpop.f32.mrb[6].mxu0 }
 0x167   :  { %v209_v31 = vpop.f32.mrb[7].mxu0 }
 0x16b   :  { %v456_v32 = vpop.f32.mrb[12].mxu1 }
 0x16c   :  { %v464_v33 = vadd.f32 %v456_v32, %v357_v17  ;;  %v308_v34 = vpop.f32.mrb[8].mxu0  ;;  %v2860_v35 = vpop.f32.mrb[13].mxu1 }
 0x16d   :  { %v355_v37 = vadd.f32 %v308_v34, %v205_v23  ;;  %v310_v38 = vpop.f32.mrb[9].mxu0  ;;  %v459_v39 = vpop.f32.mrb[14].mxu1 }
 0x16e   :  { %v356_v40 = vadd.f32 %v310_v38, %v207_v26  ;;  %v312_v41 = vpop.f32.mrb[10].mxu0  ;;  %v2861_v43 = vpop.f32.mrb[15].mxu1 }
 0x16f   :  { %v313_v44 = vpop.f32.mrb[11].mxu0 }
 0x173   :  { %v563_v46 = vpop.f32.mrb[16].mxu1 }
 0x174   :  { %v571_v47 = vadd.f32 %v563_v46, %v464_v33  ;;  %v415_v48 = vpop.f32.mrb[12].mxu0  ;;  %v2866_v49 = vpop.f32.mrb[17].mxu1 }
 0x175   :  { %v462_v51 = vadd.f32 %v415_v48, %v355_v37  ;;  %v417_v53 = vpop.f32.mrb[13].mxu0  ;;  %v566_v54 = vpop.f32.mrb[18].mxu1 }
 0x176   :  { %v463_v56 = vadd.f32 %v417_v53, %v356_v40  ;;  %v419_v57 = vpop.f32.mrb[14].mxu0  ;;  %v2867_v59 = vpop.f32.mrb[19].mxu1 }
 0x177   :  { %v420_v60 = vpop.f32.mrb[15].mxu0 }
 0x17b   :  { %v670_v61 = vpop.f32.mrb[20].mxu1 }
 0x17c   :  { %v678_v62 = vadd.f32 %v670_v61, %v571_v47  ;;  %v522_v63 = vpop.f32.mrb[16].mxu0  ;;  %v2872_v0 = vpop.f32.mrb[21].mxu1  ;;  %v1273_v61 = vsel %vm67_vm1, %v3446_v55, 0 }
 0x17d   :  { %v569_v1 = vadd.f32 %v522_v63, %v462_v51  ;;  %v524_v3 = vpop.f32.mrb[17].mxu0  ;;  %v673_v5 = vpop.f32.mrb[22].mxu1 }
 0x17e   :  { %v570_v6 = vadd.f32 %v524_v3, %v463_v56  ;;  %v526_v7 = vpop.f32.mrb[18].mxu0  ;;  %v2873_v8 = vpop.f32.mrb[23].mxu1 }
 0x17f   :  { %v527_v10 = vpop.f32.mrb[19].mxu0 }
 0x180   :  { %v1455_v10 = vpop.permute.xlu0 %1454 }
 0x183   :  { %v777_v12 = vpop.f32.mrb[24].mxu1 }
 0x184   :  { %v785_v14 = vadd.f32 %v777_v12, %v678_v62  ;;  %v629_v15 = vpop.f32.mrb[20].mxu0  ;;  %v2878_v16 = vpop.f32.mrb[25].mxu1 }
 0x185   :  { %v676_v17 = vadd.f32 %v629_v15, %v569_v1  ;;  %v631_v21 = vpop.f32.mrb[21].mxu0  ;;  %v780_v22 = vpop.f32.mrb[26].mxu1 }
 0x186   :  { %v677_v23 = vadd.f32 %v631_v21, %v570_v6  ;;  %v633_v24 = vpop.f32.mrb[22].mxu0  ;;  %v2879_v25 = vpop.f32.mrb[27].mxu1  ;;  %v1363_v21 = vsel %vm67_vm1, %v3199_v18, 0 }
 0x187   :  { %v634_v26 = vpop.f32.mrb[23].mxu0  ;;  %v1453_v12 = vpop.permute.xlu1 %1452 }
 0x188   :  { %v1458_v24 = vsel %vm259_vm4, %v1453_v12, %v1455_v10  ;;  %v3042_v12 = vld [vmem:[%s3687_s3 + $0x80] sm:$0xff]  }
 0x189   :  { %v1461_v18 = vsel %vm67_vm1, %v1458_v24, 0 }
 0x18b   :  { %v884_v28 = vpop.f32.mrb[28].mxu1 }
 0x18c   :  { %v892_v30 = vadd.f32 %v884_v28, %v785_v14  ;;  %v736_v31 = vpop.f32.mrb[24].mxu0  ;;  %v2884_v32 = vpop.f32.mrb[29].mxu1  ;;  %v1279_v14 = vsel %vm67_vm1, %v3440_v52, 0 }
 0x18d   :  { %v783_v33 = vadd.f32 %v736_v31, %v676_v17  ;;  %v738_v34 = vpop.f32.mrb[25].mxu0  ;;  %v887_v35 = vpop.f32.mrb[30].mxu1  ;;  %v1369_v17 = vsel %vm67_vm1, %v3202_v19, 0 }
 0x18e   :  { %v784_v37 = vadd.f32 %v738_v34, %v677_v23  ;;  %v740_v38 = vpop.f32.mrb[26].mxu0  ;;  %v2885_v39 = vpop.f32.mrb[31].mxu1 }
 0x18f   :  { %v741_v40 = vpop.f32.mrb[27].mxu0  ;;  %v1457_v52 = vpop.permute.xlu1 %1456 }
 0x190   :  { %v1459_v22 = vsel %vm259_vm4, %v1455_v10, %v1457_v52  ;;  %v3040_v10 = vld [vmem:[%s3687_s3 + $0x60] sm:$0xff]  }
 0x193   :  { %v991_v41 = vpop.f32.mrb[32].mxu1  ;;  %v1556_v19 = vpop.permute.xlu1 %1555 }
 0x194   :  { %v999_v43 = vadd.f32 %v991_v41, %v892_v30  ;;  %v843_v44 = vpop.f32.mrb[28].mxu0  ;;  %v2890_v46 = vpop.f32.mrb[33].mxu1 }
 0x195   :  { %v890_v47 = vadd.f32 %v843_v44, %v783_v33  ;;  %v845_v48 = vpop.f32.mrb[29].mxu0  ;;  %v994_v49 = vpop.f32.mrb[34].mxu1 }
 0x196   :  { %v1008_v51 = vadd.f32 %v3425_v45, %v999_v43  ;;  %v891_v53 = vadd.f32 %v845_v48, %v784_v37  ;;  %v847_v54 = vpop.f32.mrb[30].mxu0  ;;  %v2891_v56 = vpop.f32.mrb[35].mxu1 }
 0x197   :  { %v848_v57 = vpop.f32.mrb[31].mxu0 }
 0x198   :  { %v1011_v59 = vmax.f32 %v1008_v51, 0.0 }
 0x19a   :  { %v1014_v60 = vpack.c.bf16 %v1011_v59, %v1011_v59 }
 0x19c   :  { %v950_v62 = vpop.f32.mrb[32].mxu0  ;;  %2897 = vmatmul.mubr.msk.bf16.vlgmr.msra.gmra.mrb[36].mxu1 %vm1159_vm11, %v1014_v60 }
 0x19d   :  { %v997_v63 = vadd.f32 %v950_v62, %v890_v47  ;;  %v952_v0 = vpop.f32.mrb[33].mxu0  ;;  %1282 = vmatpush1.bf16.msra.mxu1 %v1273_v61  ;;  %1313 = vmatprep.mubr.bf16.mxu1 %v3053_v11 }
 0x19e   :  { %v998_v1 = vadd.f32 %v952_v0, %v891_v53  ;;  %v954_v3 = vpop.f32.mrb[34].mxu0  ;;  %2900 = vmatprep.subr.bf16.mxu1 %v3051_v4 }
 0x19f   :  { %v1006_v5 = vadd.f32 %v3425_v45, %v997_v63  ;;  %v955_v6 = vpop.f32.mrb[35].mxu0  ;;  %v3032_v3 = vld [vmem:[%s3687_s3 + $0x40] sm:$0xff]  }
 0x1a0   :  { %v1007_v7 = vadd.f32 %v3425_v45, %v998_v1  ;;  %v1554_v45 = vpop.permute.xlu0 %1553  ;;  %v3037_v6 = vld [vmem:[%s3687_s3 + $0x10] sm:$0xff]  }
 0x1a1   :  { %v1009_v8 = vmax.f32 %v1006_v5, 0.0  ;;  %v1559_v30 = vsel %vm366_vm5, %v1554_v45, %v1556_v19  ;;  %v3035_v5 = vld [vmem:[%s3687_s3 + $0x8] sm:$0xff]   ;;  %v3047_v45 = vld [vmem:[%s3687_s3 + $0x30] sm:$0xff]  }
 0x1a2   :  { %v1010_v55 = vmax.f32 %v1007_v7, 0.0  ;;  %v1562_v32 = vsel %vm67_vm1, %v1559_v30, 0  ;;  %v3038_v7 = vld [vmem:[%s3687_s3 + $0x58] sm:$0xff]  }
 0x1a3   :  { %v1012_v16 = vpack.c.bf16 %v1009_v8, %v1009_v8  ;;  %v3039_v8 = vld [vmem:[%s3687_s3 + $0x18] sm:$0xff]  }
 0x1a4   :  { %v1013_v15 = vpack.c.bf16 %v1010_v55, %v1010_v55  ;;  %2690 = vmatmul.mubr.msk.bf16.vlgmr.msra.gmra.mrb[40].mxu1 %vm63_vm2, %v3263_v27  ;;  %v1558_v23 = vpop.permute.xlu0 %1557  ;;  %v3041_v55 = vld [vmem:[%s3687_s3 + $0x20] sm:$0xff]  }
 0x1a5   :  { %2901 = vmatpush3.bf16.msra.mxu1 %v1279_v14  ;;  %2902 = vmatprep.mubr.msk.bf16.mxu1 %vm3052_vm0, %v3051_v4  ;;  %v1560_v25 = vsel %vm366_vm5, %v1556_v19, %v1558_v23  ;;  %v1568_v28 = vsel %vm67_vm1, %v1558_v23, 0  ;;  %v3043_v14 = vld [vmem:[%s3687_s3 + $0x68] sm:$0xff]  }
 0x1a6   :  { %1195 = vmatprep.mubr.bf16.mxu0 %v1013_v15  ;;  %2692 = vmatprep.subr.msk.bf16.mxu1 %vm67_vm1, %v3208_v20  ;;  %v1467_v20 = vsel %vm67_vm1, %v1457_v52, 0  ;;  %v3044_v15 = vld [vmem:[%s3687_s3 + $0x28] sm:$0xff]   ;;  %v3049_v52 = vld [vmem:[%s3687_s3 + $0x38] sm:$0xff]  }
 0x1a7   :  { %1196 = vmatmul.mubr.bf16.vlgmr.msra.gmra.mrb[36].mxu0 %v1012_v16  ;;  %v3045_v16 = vld [vmem:[%s3687_s3 + $0x88] sm:$0xff]  }
 0x1a8   :  { %2907 = vmatpush3.bf16.msra.mxu0 %v1369_v17  ;;  %2908 = vmatprep.mubr.msk.bf16.mxu0 %vm3052_vm0, %v3051_v4  ;;  %v1657_v26 = vpop.permute.xlu0 %1656  ;;  %v3046_v17 = vld [vmem:[%s3687_s3 + $0x70] sm:$0xff]  }
 0x1a9   :  { %2912 = vmatprep.subr.bf16.mxu0 %v3051_v4 }
 0x1ac   :  { %2903 = vmatmul.mubr.msk.bf16.vlgmr.msra.gmra.mrb[44].mxu1 %vm63_vm2, %v3263_v27  ;;  %v1655_v27 = vpop.permute.xlu1 %1654 }
 0x1ad   :  { %1372 = vmatpush1.bf16.msra.mxu1 %v1363_v21  ;;  %1403 = vmatprep.mubr.bf16.mxu1 %v3053_v11  ;;  %v1660_v37 = vsel %vm473_vm6, %v1655_v27, %v1657_v26 }
 0x1ae   :  { %2695 = vmatprep.subr.msk.bf16.mxu1 %vm67_vm1, %v1459_v22 }
 0x1af   :  { %2909 = vmatmul.mubr.msk.bf16.vlgmr.msra.gmra.mrb[40].mxu0 %vm63_vm2, %v3126_v9 }
 0x1b0   :  { %2913 = vmatpush3.bf16.msra.mxu0 %v1467_v20  ;;  %2914 = vmatprep.mubr.msk.bf16.mxu0 %vm3052_vm0, %v3051_v4  ;;  %v1659_v31 = vpop.permute.xlu1 %1658 }
 0x1b1   :  { %2918 = vmatprep.subr.bf16.mxu0 %v3051_v4  ;;  %v1661_v33 = vsel %vm473_vm6, %v1657_v26, %v1659_v31  ;;  %v1669_v35 = vsel %vm67_vm1, %v1659_v31, 0 }
 0x1b4   :  { %2693 = vmatmul.mubr.msk.bf16.vlgmr.msra.gmra.mrb[48].mxu1 %vm63_vm2, %v3126_v9  ;;  %v1756_v9 = vpop.permute.xlu0 %1755  ;;  %v1758_v34 = vpop.permute.xlu1 %1757 }
 0x1b5   :  { %1470 = vmatpush1.bf16.msra.mxu1 %v1461_v18  ;;  %1501 = vmatprep.mubr.bf16.mxu1 %v3053_v11  ;;  %v1761_v44 = vsel %vm580_vm7, %v1756_v9, %v1758_v34 }
 0x1b6   :  { %2698 = vmatprep.subr.msk.bf16.mxu1 %vm67_vm1, %v1560_v25 }
 0x1b7   :  { %2915 = vmatmul.mubr.msk.bf16.vlgmr.msra.gmra.mrb[44].mxu0 %vm63_vm2, %v3273_v29 }
 0x1b8   :  { %2919 = vmatpush3.bf16.msra.mxu0 %v1568_v28  ;;  %2920 = vmatprep.mubr.msk.bf16.mxu0 %vm3052_vm0, %v3051_v4  ;;  %v1760_v38 = vpop.permute.xlu0 %1759  ;;  %v1857_v39 = vpop.permute.xlu1 %1856 }
 0x1b9   :  { %2924 = vmatprep.subr.bf16.mxu0 %v3051_v4  ;;  %v1762_v40 = vsel %vm580_vm7, %v1758_v34, %v1760_v38  ;;  %v1770_v41 = vsel %vm67_vm1, %v1760_v38, 0 }
 0x1bc   :  { %2696 = vmatmul.mubr.msk.bf16.vlgmr.msra.gmra.mrb[52].mxu1 %vm63_vm2, %v3273_v29  ;;  %v1663_v29 = vsel %vm67_vm1, %v1660_v37, 0  ;;  %v1859_v43 = vpop.permute.xlu0 %1858  ;;  %v1861_v46 = vpop.permute.xlu1 %1860 }
 0x1bd   :  { %1571 = vmatpush1.bf16.msra.mxu1 %v1562_v32  ;;  %1602 = vmatprep.mubr.bf16.mxu1 %v3053_v11  ;;  %v1863_v47 = vsel %vm687_vm8, %v1859_v43, %v1861_v46  ;;  %v1871_v51 = vsel %vm67_vm1, %v1861_v46, 0  ;;  %v1862_v53 = vsel %vm687_vm8, %v1857_v39, %v1859_v43 }
 0x1be   :  { %2701 = vmatprep.subr.msk.bf16.mxu1 %vm67_vm1, %v1661_v33  ;;  %v1865_v54 = vsel %vm67_vm1, %v1862_v53, 0 }
 0x1bf   :  { %2921 = vmatmul.mubr.msk.bf16.vlgmr.msra.gmra.mrb[48].mxu0 %vm63_vm2, %v3283_v36 }
 0x1c0   :  { %2925 = vmatpush3.bf16.msra.mxu0 %v1669_v35  ;;  %2926 = vmatprep.mubr.msk.bf16.mxu0 %vm3052_vm0, %v3051_v4  ;;  %v1958_v48 = vpop.permute.xlu0 %1957  ;;  %v1960_v49 = vpop.permute.xlu1 %1959 }
 0x1c1   :  { %2930 = vmatprep.subr.bf16.mxu0 %v3051_v4  ;;  %v1963_v60 = vsel %vm794_vm9, %v1958_v48, %v1960_v49 }
 0x1c2   :  { %v1966_v62 = vsel %vm67_vm1, %v1963_v60, 0 }
 0x1c4   :  { %2699 = vmatmul.mubr.msk.bf16.vlgmr.msra.gmra.mrb[56].mxu1 %vm63_vm2, %v3283_v36  ;;  %v1764_v36 = vsel %vm67_vm1, %v1761_v44, 0  ;;  %v2059_v56 = vpop.permute.xlu1 %2058 }
 0x1c5   :  { %1672 = vmatpush1.bf16.msra.mxu1 %v1663_v29  ;;  %1703 = vmatprep.mubr.bf16.mxu1 %v3053_v11 }
 0x1c6   :  { %2704 = vmatprep.subr.msk.bf16.mxu1 %vm67_vm1, %v1762_v40 }
 0x1c7   :  { %2927 = vmatmul.mubr.msk.bf16.vlgmr.msra.gmra.mrb[52].mxu0 %vm63_vm2, %v3298_v42 }
 0x1c8   :  { %2931 = vmatpush3.bf16.msra.mxu0 %v1770_v41  ;;  %2932 = vmatprep.mubr.msk.bf16.mxu0 %vm3052_vm0, %v3051_v4  ;;  %v2063_v61 = vpop.permute.xlu1 %2062 }
 0x1c9   :  { %2936 = vmatprep.subr.bf16.mxu0 %v3051_v4  ;;  %v2073_v0 = vsel %vm67_vm1, %v2063_v61, 0 }
 0x1cc   :  { %2702 = vmatmul.mubr.msk.bf16.vlgmr.msra.gmra.mrb[60].mxu1 %vm63_vm2, %v3298_v42  ;;  %v1962_v42 = vpop.permute.xlu0 %1961 }
 0x1cd   :  { %1773 = vmatpush1.bf16.msra.mxu1 %v1764_v36  ;;  %1804 = vmatprep.mubr.bf16.mxu1 %v3053_v11  ;;  %v1964_v57 = vsel %vm794_vm9, %v1960_v49, %v1962_v42  ;;  %v1972_v59 = vsel %vm67_vm1, %v1962_v42, 0 }
 0x1ce   :  { %2707 = vmatprep.subr.msk.bf16.mxu1 %vm67_vm1, %v1863_v47 }
 0x1cf   :  { %2933 = vmatmul.mubr.msk.bf16.vlgmr.msra.gmra.mrb[56].mxu0 %vm63_vm2, %v3313_v50 }
 0x1d0   :  { %2937 = vmatpush3.bf16.msra.mxu0 %v1871_v51  ;;  %2938 = vmatprep.mubr.msk.bf16.mxu0 %vm3052_vm0, %v3051_v4 }
 0x1d1   :  { %2942 = vmatprep.subr.bf16.mxu0 %v3051_v4 }
 0x1d4   :  { %2705 = vmatmul.mubr.msk.bf16.vlgmr.msra.gmra.mrb[64].mxu1 %vm63_vm2, %v3313_v50  ;;  %v2061_v50 = vpop.permute.xlu0 %2060 }
 0x1d5   :  { %1874 = vmatpush1.bf16.msra.mxu1 %v1865_v54  ;;  %1905 = vmatprep.mubr.bf16.mxu1 %v3053_v11  ;;  %v2065_v63 = vsel %vm901_vm10, %v2061_v50, %v2063_v61  ;;  %v2064_v1 = vsel %vm901_vm10, %v2059_v56, %v2061_v50 }
 0x1d6   :  { %2710 = vmatprep.subr.msk.bf16.mxu1 %vm67_vm1, %v1964_v57 }
 0x1d7   :  { %2939 = vmatmul.mubr.msk.bf16.vlgmr.msra.gmra.mrb[60].mxu0 %vm63_vm2, %v3328_v58 }
 0x1d8   :  { %2943 = vmatpush3.bf16.msra.mxu0 %v1972_v59  ;;  %2944 = vmatprep.mubr.msk.bf16.mxu0 %vm3052_vm0, %v3051_v4 }
 0x1d9   :  { %2948 = vmatprep.subr.bf16.mxu0 %v3051_v4 }
 0x1dc   :  { %2708 = vmatmul.mubr.msk.bf16.vlgmr.msra.gmra.mrb[68].mxu1 %vm63_vm2, %v3328_v58  ;;  %v2067_v58 = vsel %vm67_vm1, %v2064_v1, 0 }
 0x1dd   :  { %1975 = vmatpush1.bf16.msra.mxu1 %v1966_v62  ;;  %2006 = vmatprep.mubr.bf16.mxu1 %v3053_v11 }
 0x1de   :  { %2713 = vmatprep.subr.msk.bf16.mxu1 %vm67_vm1, %v2065_v63 }
 0x1df   :  { %2945 = vmatmul.mubr.msk.bf16.vlgmr.msra.gmra.mrb[64].mxu0 %vm63_vm2, %v3343_v2 }
 0x1e0   :  { %2949 = vmatpush3.bf16.msra.mxu0 %v2073_v0  ;;  %2950 = vmatprep.mubr.msk.bf16.mxu0 %vm3052_vm0, %v3051_v4 }
 0x1e1   :  { %2954 = vmatprep.subr.bf16.mxu0 %v3051_v4 }
 0x1e4   :  { %2711 = vmatmul.mubr.msk.bf16.vlgmr.msra.gmra.mrb[72].mxu1 %vm63_vm2, %v3343_v2  ;;  %v3033_v2 = vld [vmem:[%s3687_s3] sm:$0xff]  }
 0x1e5   :  { %2076 = vmatpush1.bf16.msra.mxu1 %v2067_v58  ;;  %2107 = vmatprep.mubr.bf16.mxu1 %v3053_v11  ;;  %v3034_v11 = vld [vmem:[%s3687_s3 + $0x48] sm:$0xff]  }
 0x1e6   :  { %2802 = vmatprep.subr.bf16.mxu1 %v3032_v3 }
 0x1e7   :  { %2951 = vmatmul.mubr.msk.bf16.vlgmr.msra.gmra.mrb[68].mxu0 %vm63_vm2, %v3358_v13 }
 0x1e8   :  { %2958 = vmatprep.mubr.msk.bf16.mxu0 %vm3052_vm0, %v3051_v4  ;;  %2955 = vmatpush3.bf16.msra.mxu0 %v3042_v12  ;;  %vm2633_vm0 = vcmask 15360  }
 0x1e9   :  { %2956 = vmatprep.subr.bf16.mxu0 %v3051_v4  ;;  %v3048_v4 = vld [vmem:[%s3687_s3 + $0x78] sm:$0xff]  }
 0x1ec   :  { %2714 = vmatmul.mubr.msk.bf16.vlgmr.msra.gmra.mrb[76].mxu1 %vm63_vm2, %v3358_v13  ;;  %v3036_v13 = vld [vmem:[%s3687_s3 + $0x50] sm:$0xff]   ;;  %2957 = vmatpush3.bf16.msra.mxu0 %v3045_v16 }
 0x1ed   :  { %2803 = vmatpush3.bf16.msra.mxu1 %v3033_v2 }
 0x1ee   :  { %2804 = vmatprep.subr.bf16.mxu1 %v3034_v11 }
 0x1f1   :  { %2805 = vmatpush3.bf16.msra.mxu1 %v3035_v5 }
 0x1f2   :  { %2806 = vmatprep.subr.bf16.mxu1 %v3036_v13 }
 0x1f5   :  { %2807 = vmatpush3.bf16.msra.mxu1 %v3037_v6 }
 0x1f6   :  { %2808 = vmatprep.subr.bf16.mxu1 %v3038_v7 }
 0x1f9   :  { %2809 = vmatpush3.bf16.msra.mxu1 %v3039_v8 }
 0x1fa   :  { %2810 = vmatprep.subr.bf16.mxu1 %v3040_v10 }
 0x1fd   :  { %2811 = vmatpush3.bf16.msra.mxu1 %v3041_v55 }
 0x1fe   :  { %2812 = vmatprep.subr.bf16.mxu1 %v3043_v14 }
 0x201   :  { %2813 = vmatpush3.bf16.msra.mxu1 %v3044_v15 }
 0x202   :  { %2814 = vmatprep.subr.bf16.mxu1 %v3046_v17 }
 0x205   :  { %2815 = vmatpush3.bf16.msra.mxu1 %v3047_v45 }
 0x206   :  { %2816 = vmatprep.subr.bf16.mxu1 %v3048_v4 }
 0x209   :  { %2817 = vmatpush3.bf16.msra.mxu1 %v3049_v52 }
 0x26f   :  { %v1237_v21 = vpop.f32.mrb[36].mxu1 }
 0x270   :  { %v2898_v22 = vpop.f32.mrb[37].mxu1 }
 0x271   :  { %v1240_v19 = vpop.f32.mrb[38].mxu1 }
 0x272   :  { %v2899_v20 = vpop.f32.mrb[39].mxu1 }
 0x277   :  { %v1315_v23 = vpop.f32.mrb[40].mxu1 }
 0x278   :  { %v1317_v24 = vpop.f32.mrb[41].mxu1 }
 0x279   :  { %v1319_v18 = vpop.f32.mrb[42].mxu1 }
 0x27a   :  { %v2775_v27 = vpop.f32.mrb[36].mxu0  ;;  %v1320_v25 = vpop.f32.mrb[43].mxu1 }
 0x27b   :  { %v2776_v26 = vpop.f32.mrb[37].mxu0 }
 0x27c   :  { %v2777_v28 = vadd.f32 %v2776_v26, %v2775_v27  ;;  %v2778_v30 = vpop.f32.mrb[38].mxu0 }
 0x27d   :  { %v2779_v31 = vpop.f32.mrb[39].mxu0 }
 0x27e   :  { %v1238_v9 = vadd.f32 %v2777_v28, %v1237_v21 }
 0x27f   :  { %v1356_v32 = vpop.f32.mrb[44].mxu1 }
 0x280   :  { %v2904_v33 = vpop.f32.mrb[45].mxu1  ;;  %1244 = vst.msk [vmem:[#allocation2] sm:$0xff] %vm1243_vm12, %v1238_v9 }
 0x281   :  { %v1359_v34 = vpop.f32.mrb[46].mxu1 }
 0x282   :  { %v2905_v35 = vpop.f32.mrb[47].mxu1  ;;  %v1446_v37 = vpop.f32.mrb[40].mxu0 }
 0x283   :  { %v1447_v38 = vadd.f32 %v1446_v37, %v1356_v32  ;;  %v2910_v29 = vpop.f32.mrb[41].mxu0 }
 0x284   :  { %v1449_v39 = vpop.f32.mrb[42].mxu0 }
 0x285   :  { %v2911_v40 = vpop.f32.mrb[43].mxu0 }
 0x287   :  { %v1405_v41 = vpop.f32.mrb[48].mxu1 }
 0x288   :  { %v1406_v43 = vadd.f32 %v1405_v41, %v1315_v23  ;;  %v1407_v44 = vpop.f32.mrb[49].mxu1 }
 0x289   :  { %v1408_v46 = vadd.f32 %v1407_v44, %v1317_v24  ;;  %v1409_v36 = vpop.f32.mrb[50].mxu1 }
 0x28a   :  { %v1410_v47 = vpop.f32.mrb[51].mxu1  ;;  %v1544_v48 = vpop.f32.mrb[44].mxu0 }
 0x28b   :  { %v1552_v49 = vadd.f32 %v1544_v48, %v1447_v38  ;;  %v2916_v51 = vpop.f32.mrb[45].mxu0 }
 0x28c   :  { %v1547_v53 = vpop.f32.mrb[46].mxu0 }
 0x28d   :  { %v2917_v42 = vpop.f32.mrb[47].mxu0 }
 0x28f   :  { %v1503_v54 = vpop.f32.mrb[52].mxu1 }
 0x290   :  { %v1550_v56 = vadd.f32 %v1503_v54, %v1406_v43  ;;  %v1505_v57 = vpop.f32.mrb[53].mxu1  ;;  %v2163_v54 = vpop.permute.xlu0 %2162 }
 0x291   :  { %v1551_v59 = vadd.f32 %v1505_v57, %v1408_v46  ;;  %v1507_v60 = vpop.f32.mrb[54].mxu1 }
 0x292   :  { %v1508_v61 = vpop.f32.mrb[55].mxu1  ;;  %v1645_v50 = vpop.f32.mrb[48].mxu0 }
 0x293   :  { %v1653_v62 = vadd.f32 %v1645_v50, %v1552_v49  ;;  %v2922_v63 = vpop.f32.mrb[49].mxu0 }
 0x294   :  { %v1648_v0 = vpop.f32.mrb[50].mxu0 }
 0x295   :  { %v2923_v1 = vpop.f32.mrb[51].mxu0 }
 0x297   :  { %v1604_v58 = vpop.f32.mrb[56].mxu1 }
 0x298   :  { %v1651_v3 = vadd.f32 %v1604_v58, %v1550_v56  ;;  %v1606_v2 = vpop.f32.mrb[57].mxu1 }
 0x299   :  { %v1652_v11 = vadd.f32 %v1606_v2, %v1551_v59  ;;  %v1608_v5 = vpop.f32.mrb[58].mxu1 }
 0x29a   :  { %v1609_v13 = vpop.f32.mrb[59].mxu1  ;;  %v1746_v6 = vpop.f32.mrb[52].mxu0 }
 0x29b   :  { %v1754_v7 = vadd.f32 %v1746_v6, %v1653_v62  ;;  %v2928_v8 = vpop.f32.mrb[53].mxu0 }
 0x29c   :  { %v1749_v10 = vpop.f32.mrb[54].mxu0 }
 0x29d   :  { %v2929_v55 = vpop.f32.mrb[55].mxu0 }
 0x29f   :  { %v1705_v12 = vpop.f32.mrb[60].mxu1 }
 0x2a0   :  { %v1752_v14 = vadd.f32 %v1705_v12, %v1651_v3  ;;  %v1707_v15 = vpop.f32.mrb[61].mxu1 }
 0x2a1   :  { %v1753_v16 = vadd.f32 %v1707_v15, %v1652_v11  ;;  %v1709_v17 = vpop.f32.mrb[62].mxu1 }
 0x2a2   :  { %v1710_v45 = vpop.f32.mrb[63].mxu1  ;;  %v1847_v4 = vpop.f32.mrb[56].mxu0  ;;  %v2408_v17 = vld [vmem:[%s3688_s4] sm:$0xff] }
 0x2a3   :  { %v1855_v52 = vadd.f32 %v1847_v4, %v1754_v7  ;;  %v2934_v21 = vpop.f32.mrb[57].mxu0 }
 0x2a4   :  { %v1850_v22 = vpop.f32.mrb[58].mxu0  ;;  %v2415_v21 = vld [vmem:[%s3685_s5 + $0x18] sm:$0xff] }
 0x2a5   :  { %v2935_v19 = vpop.f32.mrb[59].mxu0  ;;  %v2541_v22 = vld [vmem:[%s3686_s7 + $0x8] sm:$0x3] }
 0x2a7   :  { %v1806_v20 = vpop.f32.mrb[64].mxu1 }
 0x2a8   :  { %v1853_v23 = vadd.f32 %v1806_v20, %v1752_v14  ;;  %v1808_v24 = vpop.f32.mrb[65].mxu1 }
 0x2a9   :  { %v1854_v18 = vadd.f32 %v1808_v24, %v1753_v16  ;;  %v1810_v27 = vpop.f32.mrb[66].mxu1  ;;  %v2410_v24 = vld [vmem:[%s3688_s4 + $0x10] sm:$0xff] }
 0x2aa   :  { %v1811_v25 = vpop.f32.mrb[67].mxu1  ;;  %v1948_v26 = vpop.f32.mrb[60].mxu0  ;;  %v2538_v27 = vld [vmem:[%s3689_s6] sm:$0xff] }
 0x2ab   :  { %v1956_v28 = vadd.f32 %v1948_v26, %v1855_v52  ;;  %v2940_v30 = vpop.f32.mrb[61].mxu0  ;;  %v2413_v52 = vld [vmem:[%s3685_s5 + $0x8] sm:$0xff]  ;;  %v2419_v26 = vpop.permute.xlu0 %2418 }
 0x2ac   :  { %v1951_v31 = vpop.f32.mrb[62].mxu0 }
 0x2ad   :  { %v2941_v9 = vpop.f32.mrb[63].mxu0 }
 0x2af   :  { %v1907_v32 = vpop.f32.mrb[68].mxu1 }
 0x2b0   :  { %v1954_v33 = vadd.f32 %v1907_v32, %v1853_v23  ;;  %v1909_v34 = vpop.f32.mrb[69].mxu1  ;;  %v2409_v23 = vld [vmem:[%s3688_s4 + $0x8] sm:$0xff] }
 0x2b1   :  { %v1955_v35 = vadd.f32 %v1909_v34, %v1854_v18  ;;  %v1911_v37 = vpop.f32.mrb[70].mxu1  ;;  %v2411_v18 = vld [vmem:[%s3688_s4 + $0x18] sm:$0xff] }
 0x2b2   :  { %v1912_v38 = vpop.f32.mrb[71].mxu1  ;;  %v2049_v29 = vpop.f32.mrb[64].mxu0 }
 0x2b3   :  { %v2057_v39 = vadd.f32 %v2049_v29, %v1956_v28  ;;  %v2946_v40 = vpop.f32.mrb[65].mxu0  ;;  %v2429_v37 = vpop.permute.xlu0 %2428 }
 0x2b4   :  { %v2052_v41 = vpop.f32.mrb[66].mxu0 }
 0x2b5   :  { %v2947_v43 = vpop.f32.mrb[67].mxu0 }
 0x2b7   :  { %v2008_v44 = vpop.f32.mrb[72].mxu1 }
 0x2b8   :  { %v2055_v46 = vadd.f32 %v2008_v44, %v1954_v33  ;;  %v2010_v36 = vpop.f32.mrb[73].mxu1 }
 0x2b9   :  { %v2056_v47 = vadd.f32 %v2010_v36, %v1955_v35  ;;  %v2012_v48 = vpop.f32.mrb[74].mxu1 }
 0x2ba   :  { %v2013_v49 = vpop.f32.mrb[75].mxu1  ;;  %v2150_v51 = vpop.f32.mrb[68].mxu0 }
 0x2bb   :  { %v2158_v53 = vadd.f32 %v2150_v51, %v2057_v39  ;;  %v2952_v42 = vpop.f32.mrb[69].mxu0  ;;  %v2545_v48 = vpop.permute.xlu0 %2544 }
 0x2bc   :  { %v2153_v56 = vpop.f32.mrb[70].mxu0 }
 0x2bd   :  { %v2167_v57 = vadd.f32 %v2163_v54, %v2158_v53  ;;  %v2953_v59 = vpop.f32.mrb[71].mxu0 }
 0x2bf   :  { %v2170_v60 = vmax.f32 %v2167_v57, 0.0  ;;  %v2109_v61 = vpop.f32.mrb[76].mxu1 }
 0x2c0   :  { %v2156_v50 = vadd.f32 %v2109_v61, %v2055_v46  ;;  %v2111_v62 = vpop.f32.mrb[77].mxu1  ;;  %v2539_v46 = vld [vmem:[%s3689_s6 + $0x8] sm:$0x3] }
 0x2c1   :  { %v2173_v63 = vpack.c.bf16 %v2170_v60, %v2170_v60  ;;  %v2157_v0 = vadd.f32 %v2111_v62, %v2056_v47  ;;  %v2113_v1 = vpop.f32.mrb[78].mxu1 }
 0x2c2   :  { %v2165_v58 = vadd.f32 %v2163_v54, %v2156_v50  ;;  %v2114_v3 = vpop.f32.mrb[79].mxu1 }
 0x2c3   :  { %v2166_v2 = vadd.f32 %v2163_v54, %v2157_v0  ;;  %2959 = vmatmul.mubr.msk.bf16.vlgmr.msra.gmra.mrb[72].mxu0 %vm1159_vm11, %v2173_v63 }
 0x2c4   :  { %v2168_v11 = vmax.f32 %v2165_v58, 0.0  ;;  %2964 = vmatprep.mubr.msk.f32.mxu0 %vm2436_vm13, %v2408_v17 }
 0x2c5   :  { %v2169_v5 = vmax.f32 %v2166_v2, 0.0 }
 0x2c6   :  { %v2171_v6 = vpack.c.bf16 %v2168_v11, %v2168_v11 }
 0x2c7   :  { %v2172_v13 = vpack.c.bf16 %v2169_v5, %v2169_v5 }
 0x2c9   :  { %2353 = vmatprep.mubr.bf16.mxu1 %v2172_v13 }
 0x2ca   :  { %2354 = vmatmul.mubr.bf16.vlgmr.msra.gmra.mrb[80].mxu1 %v2171_v6 }
 0x396   :  { %v2395_v7 = vpop.f32.mrb[72].mxu0 }
 0x397   :  { %v2960_v8 = vpop.f32.mrb[73].mxu0 }
 0x398   :  { %v2398_v10 = vpop.f32.mrb[74].mxu0 }
 0x399   :  { %v2961_v55 = vpop.f32.mrb[75].mxu0 }
 0x39d   :  { %v2818_v12 = vpop.f32.mrb[80].mxu1 }
 0x39e   :  { %v2819_v14 = vpop.f32.mrb[81].mxu1 }
 0x39f   :  { %v2820_v15 = vadd.f32 %v2819_v14, %v2818_v12  ;;  %v2821_v16 = vpop.f32.mrb[82].mxu1 }
 0x3a0   :  { %v2822_v45 = vpop.f32.mrb[83].mxu1 }
 0x3a1   :  { %v2396_v4 = vadd.f32 %v2820_v15, %v2395_v7 }
 0x3a3   :  { %2402 = vrot.lane.b32.xlu1 %v2396_v4, %s3069_s29 }
 0x3a7   :  { %2423 = vperm.xlu1 %3010, %v2413_v52  }
 0x3ab   :  { %2433 = vperm.xlu1 %3010, %v2415_v21  }
 0x3af   :  { %2549 = vperm.xlu1 %3010, %v2541_v22  }
 0x415   :  { %v2403_v19 = vpop.permute.xlu1 %2402 }
 0x416   :  { %2406 = vst.msk [vmem:[#allocation2] sm:$0xff] %vm2405_vm14, %v2403_v19 }
 0x41d   :  { %v2407_v20 = vld [vmem:[#allocation2] sm:$0xff] }
 0x41e   :  { %2962 = vmatprep.subr.mxu0 %v2407_v20 }
 0x41f   :  { %2963 = vmatpush3.msra.mxu0 %v2407_v20 }
 0x420   :  { %2965 = vmatmul.mubr.msk.f32.vlgmr.msra.gmra.mrb[76].mxu0 %vm2436_vm13, %v2409_v23 }
 0x421   :  { %2967 = vmatprep.mubr.msk.f32.mxu0 %vm2436_vm13, %v2410_v24 }
 0x424   :  { %2968 = vmatmul.mubr.msk.f32.gmra.mrb[78].mxu0 %vm2436_vm13, %v2411_v18 }
 0x425   :  { %2978 = vmatprep.mubr.msk.f32.mxu0 %vm1159_vm11, %v2538_v27 }
 0x426   :  { %v2424_v25 = vpop.permute.xlu1 %2423 }
 0x42a   :  { %v2434_v34 = vpop.permute.xlu1 %2433 }
 0x42e   :  { %v2550_v36 = vpop.permute.xlu1 %2549 }
 0x4f3   :  { %v2966_v28 = vpop.f32.mrb[76].mxu0 }
 0x4f4   :  { %v2521_v30 = vadd.f32 %v2966_v28, %v2424_v25  ;;  %v2515_v31 = vpop.f32.mrb[77].mxu0 }
 0x4f5   :  { %v2516_v9 = vadd.f32 %v2515_v31, %v2419_v26 }
 0x4f6   :  { %v2535_v32 = vmax.f32 %v2521_v30, 0.0 }
 0x4f7   :  { %v2534_v33 = vmax.f32 %v2516_v9, 0.0  ;;  %v2969_v35 = vpop.f32.mrb[78].mxu0 }
 0x4f8   :  { %v2531_v38 = vadd.f32 %v2969_v35, %v2434_v34  ;;  %v2525_v29 = vpop.f32.mrb[79].mxu0 }
 0x4f9   :  { %v2981_v39 = vpack.c.bf16 %v2535_v32, %v2534_v33  ;;  %v2526_v40 = vadd.f32 %v2525_v29, %v2429_v37 }
 0x4fa   :  { %v2537_v41 = vmax.f32 %v2531_v38, 0.0 }
 0x4fb   :  { %v2536_v43 = vmax.f32 %v2526_v40, 0.0  ;;  %2982 = vmatprep.subr.bf16.mxu0 %v2981_v39 }
 0x4fc   :  { %2984 = vmatpush3.bf16.msra.mxu0 %v2981_v39 }
 0x4fd   :  { %v2985_v44 = vpack.c.bf16 %v2537_v41, %v2536_v43 }
 0x4ff   :  { %2986 = vmatprep.subr.bf16.mxu0 %v2985_v44 }
 0x500   :  { %2988 = vmatpush3.bf16.msra.mxu0 %v2985_v44 }
 0x503   :  { %2979 = vmatmul.mubr.msk.f32.vlgmr.msra.gmra.mrb[80].mxu0 %vm1159_vm11, %v2539_v46 }
 0x5d6   :  { %v2980_v47 = vpop.f32.mrb[80].mxu0 }
 0x5d7   :  { %v2630_v49 = vadd.f32 %v2980_v47, %v2550_v36  ;;  %v2624_v51 = vpop.f32.mrb[81].mxu0 }
 0x5d8   :  { %v2625_v53 = vadd.f32 %v2624_v51, %v2545_v48 }
 0x5d9   :  { %2636 = vst.msk [vmem:[%s3690_s8 + $0x8] sm:$0x3] %vm2635_vm15, %v2630_v49 }
 0x5da   :  { %2634 = vst.msk [vmem:[%s3690_s8] sm:$0xff] %vm2633_vm0, %v2625_v53 }

</bundles_post_ra>
